<compile_context>
chip_gen: v5e
topology: v5e:2x2
jax: 0.10.0
libtpu: 0.0.40
codegen_flags: <defaults>
</compile_context>

<pallas_src>
import functools
import math

import jax
import jax.numpy as jnp
from jax import lax
from jax.experimental import pallas as pl
from jax.experimental.pallas import tpu as pltpu


# ----------------------------------------------------------------------------
# Small helpers
# ----------------------------------------------------------------------------
def _round_up(x, m):
  return ((x + m - 1) // m) * m


def _vmem_capacity_bytes():
  """Physical VMEM per TensorCore (generation-aware); conservative fallback."""
  try:
    info = pltpu.get_tpu_info()
    cap = getattr(info, "vmem_capacity_bytes", None)
    if cap:
      return int(cap)
  except Exception:
    pass
  return 64 * 1024 * 1024          # v7x-safe fallback


def _derive_time_block(T, b_blk, hp, xp_buffers):
  """Largest time block whose (multi-)buffered VMEM working set fits budget."""
  cap = _vmem_capacity_bytes()
  budget = min(cap - 24 * 1024 * 1024, (3 * cap) // 4)   # ~40MiB v7x, ~96MiB v6e
  budget = max(budget, 8 * 1024 * 1024)
  fixed = (2 * hp * 4 * hp * 2                 # W_hh bf16, double-buffered
           + 4 * 2 * b_blk * hp * 4            # h0/c0/hT/cT f32, 2 bufs each
           + 2 * b_blk * hp * 4)               # h/c scratch f32
  per_step = (xp_buffers * b_blk * 4 * hp * 2  # x_proj block, bf16
              + 2 * b_blk * hp * 2)            # out block, bf16
  tblk = (budget - fixed) // max(per_step, 1)
  return int(max(1, min(tblk, T, 512)))


def _pad_gate_cols(w, H, Hp):
  """(..., 4H) -> (..., 4Hp): gate k moved to columns [k*Hp, k*Hp+H), rest 0."""
  if Hp == H:
    return w
  pad_width = [(0, 0)] * (w.ndim - 1) + [(0, Hp - H)]
  parts = [jnp.pad(w[..., k * H:(k + 1) * H], pad_width) for k in range(4)]
  return jnp.concatenate(parts, axis=-1)


def _pad_hidden_rows(w, nd_prev, H, Hp):
  """(nd_prev*H, G) -> (nd_prev*Hp, G): rows of dir d at [d*Hp, d*Hp+H)."""
  if Hp == H:
    return w
  G = w.shape[-1]
  w = w.reshape(nd_prev, H, G)
  w = jnp.pad(w, ((0, 0), (0, Hp - H), (0, 0)))
  return w.reshape(nd_prev * Hp, G)


# ----------------------------------------------------------------------------
# Pallas kernel: one (direction, batch-block, time-block) grid step.
# ----------------------------------------------------------------------------
def _lstm_dir_time_kernel(xp_ref, h0_ref, c0_ref, whh_ref,
                          out_ref, hT_ref, cT_ref,
                          h_sc, c_sc,
                          *, num_tb, t_valid, unroll):
  # xp_ref : (TBLK, Bb, 4Hp) bf16  precomputed x @ W_ih + b for this block
  # h0/c0  : (Bb, Hp) f32          initial state for this (dir, batch block)
  # whh_ref: (Hp, 4Hp) bf16        hidden->gates weights for this direction
  # out_ref: (TBLK, Bb, Hp) bf16   per-step hidden states
  # hT/cT  : (Bb, Hp) f32          final state (written on last time block)
  # h_sc/c_sc: (Bb, Hp) f32        VMEM scratch carrying state across blocks
  TBLK, _, Hp = out_ref.shape
  d = pl.program_id(0)              # direction (parallel)
  j = pl.program_id(2)              # time block (arbitrary, innermost)
  is_fwd = d == 0

  @pl.when(j == 0)
  def _():
    h_sc[...] = h0_ref[...]
    c_sc[...] = c0_ref[...]

  w_hh = whh_ref[...]                               # bf16, hoisted out of loop
  tb_phys = jnp.where(is_fwd, j, num_tb - 1 - j)    # physical time block
  t_base = tb_phys * TBLK
  needs_mask = (num_tb * TBLK) != t_valid           # static python bool
  eff_unroll = max(1, min(unroll, TBLK))

  def run_block(masked):
    def step(s, carry):
      h, c = carry
      lt = jnp.where(is_fwd, s, TBLK - 1 - s)       # local (in-block) index
      # Only h @ W_hh is on the serial path: bf16 operands, f32 accumulation.
      gates = xp_ref[lt].astype(jnp.float32) + jnp.dot(
          h.astype(jnp.bfloat16), w_hh, preferred_element_type=jnp.float32)
      # PyTorch gate order: input, forget, cell(g), output.  Slices are
      # 128-lane aligned because Hp is a multiple of 128.
      i_g = jax.nn.sigmoid(gates[:, 0 * Hp:1 * Hp])
      f_g = jax.nn.sigmoid(gates[:, 1 * Hp:2 * Hp])
      g_g = jnp.tanh(gates[:, 2 * Hp:3 * Hp])
      o_g = jax.nn.sigmoid(gates[:, 3 * Hp:4 * Hp])
      c_new = f_g * c + i_g * g_g
      h_new = o_g * jnp.tanh(c_new)
      if masked:
        # Padded timesteps (t >= t_valid) leave the recurrent state untouched.
        valid = (t_base + lt) < t_valid
        h_new = jnp.where(valid, h_new, h)
        c_new = jnp.where(valid, c_new, c)
      out_ref[lt] = h_new.astype(out_ref.dtype)
      return h_new, c_new

    h, c = lax.fori_loop(0, TBLK, step, (h_sc[...], c_sc[...]),
                         unroll=eff_unroll)
    h_sc[...] = h
    c_sc[...] = c

    @pl.when(j == num_tb - 1)
    def _():
      hT_ref[...] = h
      cT_ref[...] = c

  if needs_mask:
    # Only the physical tail block has padded steps; everything else runs the
    # mask-free loop (removes two VPU selects/step from (num_tb-1)/num_tb of
    # the serial iterations).
    in_tail = tb_phys == num_tb - 1

    @pl.when(in_tail)
    def _():
      run_block(True)

    @pl.when(jnp.logical_not(in_tail))
    def _():
      run_block(False)
  else:
    run_block(False)


# ----------------------------------------------------------------------------
# Wrapper: one LSTM layer's recurrence (all directions) via one pallas_call.
# ----------------------------------------------------------------------------
def _lstm_recurrence_pallas(x_proj, h0, c0, w_hh, *, t_valid, time_block,
                            num_batch_blocks=1, unroll=4, xp_buffers=2):
  """x_proj (nd,t_pad,B,4Hp) bf16, h0/c0 (nd,B,Hp) f32, w_hh (nd,Hp,4Hp) bf16.

  Returns out (nd,t_pad,B,Hp) bf16, hT (nd,B,Hp) f32, cT (nd,B,Hp) f32.
  """
  nd, t_pad, B, G = x_proj.shape
  Hp = w_hh.shape[1]
  assert G == 4 * Hp
  assert t_pad % time_block == 0
  nb = num_batch_blocks
  assert B % nb == 0
  b_blk = B // nb
  num_tb = t_pad // time_block

  def t_index(d, bb, j):
    return (d, jnp.where(d == 0, j, num_tb - 1 - j), bb, 0)

  def state_index(d, bb, j):
    return (d, bb, 0)

  def w_index(d, bb, j):
    return (d, 0, 0)

  kernel = functools.partial(
      _lstm_dir_time_kernel, num_tb=num_tb, t_valid=t_valid, unroll=unroll)

  # VMEM accounting: vmem_limit tracks the actual (multi-)buffered block bytes.
  cap = _vmem_capacity_bytes()
  fixed = (2 * Hp * 4 * Hp * 2 + 4 * 2 * b_blk * Hp * 4 + 2 * b_blk * Hp * 4)
  per_step = (xp_buffers * b_blk * 4 * Hp * 2 + 2 * b_blk * Hp * 2)
  need = fixed + per_step * time_block + (4 << 20)
  vmem_limit = int(min(max(need, 16 << 20), cap - (8 << 20)))

  flops = int(2 * nd * t_pad * B * Hp * 4 * Hp)           # h @ W_hh per step
  transcendentals = int(5 * nd * t_pad * B * Hp)          # 3 sigmoid + 2 tanh
  bytes_accessed = int(2 * nd * t_pad * B * 4 * Hp        # x_proj (bf16)
                       + 2 * nd * t_pad * B * Hp          # out (bf16)
                       + 2 * nd * Hp * 4 * Hp             # W_hh (bf16)
                       + 4 * 4 * nd * B * Hp)             # h0/c0/hT/cT (f32)

  # Deeper input buffering is opt-in (use when profiling shows exposed DMA).
  if xp_buffers > 2:
    xp_spec = pl.BlockSpec((None, time_block, b_blk, 4 * Hp), t_index,
                           pipeline_mode=pl.Buffered(xp_buffers))
  else:
    xp_spec = pl.BlockSpec((None, time_block, b_blk, 4 * Hp), t_index)

  out, h_t, c_t = pl.pallas_call(
      kernel,
      out_shape=(
          jax.ShapeDtypeStruct((nd, t_pad, B, Hp), jnp.bfloat16),
          jax.ShapeDtypeStruct((nd, B, Hp), jnp.float32),
          jax.ShapeDtypeStruct((nd, B, Hp), jnp.float32),
      ),
      grid_spec=pltpu.PrefetchScalarGridSpec(
          num_scalar_prefetch=0,
          grid=(nd, nb, num_tb),
          in_specs=[
              xp_spec,                                          # x_proj
              pl.BlockSpec((None, b_blk, Hp), state_index),     # h0
              pl.BlockSpec((None, b_blk, Hp), state_index),     # c0
              pl.BlockSpec((None, Hp, 4 * Hp), w_index),        # w_hh
          ],
          out_specs=(
              pl.BlockSpec((None, time_block, b_blk, Hp), t_index),  # out
              pl.BlockSpec((None, b_blk, Hp), state_index),          # hT
              pl.BlockSpec((None, b_blk, Hp), state_index),          # cT
          ),
          scratch_shapes=[pltpu.VMEM((b_blk, Hp), jnp.float32),
                          pltpu.VMEM((b_blk, Hp), jnp.float32)],
      ),
      compiler_params=pltpu.CompilerParams(
          dimension_semantics=("parallel", "parallel", "arbitrary"),
          vmem_limit_bytes=vmem_limit),
      cost_estimate=pl.CostEstimate(
          flops=flops, transcendentals=transcendentals,
          bytes_accessed=bytes_accessed),
  )(x_proj, h0, c0, w_hh)

  return out, h_t, c_t


# ----------------------------------------------------------------------------
# Full module forward (embedding + stacked [bi]directional LSTM).
# ----------------------------------------------------------------------------
def rnn_lstm_forward(params, hidden_state, cell_state, captions,
                     *, time_block=None, unroll=4, xp_buffers=2):
  """Mirrors RNN_LSTM.forward(hidden_state, cell_state, captions)."""
  emb_table = params["embedding"]
  num_layers = params["num_layers"]
  nd = 2 if params["bidirectional"] else 1

  B, T = captions.shape
  H = params["w_hh"][0].shape[-2]
  Hp = _round_up(H, 128)                       # lane-aligned hidden width

  # Batch-block parallel axis: lets unidirectional configs use both v7x cores
  # (bidirectional already maps its 2 directions onto the 2 cores).
  nb = 2 if (nd == 1 and B >= 32 and B % 32 == 0) else 1
  b_blk = B // nb

  if time_block is None:
    time_block = _derive_time_block(T, b_blk, Hp, xp_buffers)
  time_block = int(max(1, min(time_block, T)))
  num_tb = pl.cdiv(T, time_block)
  t_pad = num_tb * time_block

  # --- pad parameters to lane-aligned Hp (no-op when H % 128 == 0) ---------
  w_ih_p, w_hh_p, b_p = [], [], []
  for layer in range(num_layers):
    wi_d, wh_d, bd = [], [], []
    for d in range(nd):
      w_ih = params["w_ih"][layer][d]          # (D_in, 4H)
      w_hh = params["w_hh"][layer][d]          # (H, 4H)
      b = params["b"][layer][d]                # (4H,)
      if layer > 0:
        w_ih = _pad_hidden_rows(w_ih, nd, H, Hp)
      w_ih = _pad_gate_cols(w_ih, H, Hp)
      w_hh = _pad_gate_cols(_pad_hidden_rows(w_hh, 1, H, Hp), H, Hp)
      b = _pad_gate_cols(b, H, Hp)
      wi_d.append(w_ih)
      wh_d.append(w_hh)
      bd.append(b)
    w_ih_p.append(jnp.stack(wi_d, 0).astype(jnp.bfloat16))   # MXU operands bf16
    w_hh_p.append(jnp.stack(wh_d, 0).astype(jnp.bfloat16))
    b_p.append(jnp.stack(bd, 0).astype(jnp.float32))

  pad_h = Hp - H
  if pad_h:
    h0_all = jnp.pad(hidden_state, ((0, 0), (0, 0), (0, pad_h)))
    c0_all = jnp.pad(cell_state, ((0, 0), (0, 0), (0, pad_h)))
  else:
    h0_all, c0_all = hidden_state, cell_state
  h0_all = h0_all.astype(jnp.float32)
  c0_all = c0_all.astype(jnp.float32)

  # --- layer-0 input: time-major embedding gather, padded on the thin side --
  cap_t = jnp.transpose(captions, (1, 0))                        # (T, B)
  x = jnp.take(emb_table.astype(jnp.bfloat16), cap_t, axis=0)    # (T, B, E)
  if t_pad != T:
    x = jnp.pad(x, ((0, t_pad - T), (0, 0), (0, 0)))

  h_finals, c_finals = [], []
  prev_out = None
  for layer in range(num_layers):
    # Hoisted input projection: one big bf16 MXU einsum per layer; for layers
    # > 0 the direction concat is fused into the contraction so the kernel's
    # (nd, T, B, Hp) output feeds straight in (no HBM transpose between layers).
    if layer == 0:
      xp = jnp.einsum("tbe,neg->ntbg", x, w_ih_p[0],
                      preferred_element_type=jnp.float32)
    else:
      w_ih_r = w_ih_p[layer].reshape(nd, nd, Hp, 4 * Hp)   # (nd_out,nd_in,Hp,4Hp)
      xp = jnp.einsum("ptbh,nphg->ntbg", prev_out, w_ih_r,
                      preferred_element_type=jnp.float32)
    xp = (xp + b_p[layer][:, None, None, :]).astype(jnp.bfloat16)

    h0 = h0_all[layer * nd:(layer + 1) * nd]
    c0 = c0_all[layer * nd:(layer + 1) * nd]
    out, h_t, c_t = _lstm_recurrence_pallas(
        xp, h0, c0, w_hh_p[layer],
        t_valid=T, time_block=time_block, num_batch_blocks=nb,
        unroll=unroll, xp_buffers=xp_buffers)
    h_finals.append(h_t)
    c_finals.append(c_t)
    prev_out = out
    # TODO(synk): inter-layer dropout (p=0.5) only applies in training mode;
    # eval-mode semantics (no dropout) are implemented here.

  # Final formatting only (single transpose, required by batch_first output).
  out_f = prev_out[:, :T, :, :H].astype(jnp.float32)      # (nd, T, B, H)
  outputs = jnp.transpose(out_f, (2, 1, 0, 3)).reshape(B, T, nd * H)
  h_n = jnp.concatenate(h_finals, axis=0)[:, :, :H]        # (layers*nd, B, H)
  c_n = jnp.concatenate(c_finals, axis=0)[:, :, :H]
  return outputs, (h_n, c_n)


# ----------------------------------------------------------------------------
# Pure-JAX f32 reference (correctness check).
# ----------------------------------------------------------------------------
def _lstm_layer_ref(x_tbd, h0, c0, w_ih, w_hh, b):
  T = x_tbd.shape[0]
  H = h0.shape[1]
  h, c = h0, c0
  outs = []
  for t in range(T):
    gates = x_tbd[t] @ w_ih + h @ w_hh + b
    i_g = jax.nn.sigmoid(gates[:, 0 * H:1 * H])
    f_g = jax.nn.sigmoid(gates[:, 1 * H:2 * H])
    g_g = jnp.tanh(gates[:, 2 * H:3 * H])
    o_g = jax.nn.sigmoid(gates[:, 3 * H:4 * H])
    c = f_g * c + i_g * g_g
    h = o_g * jnp.tanh(c)
    outs.append(h)
  return jnp.stack(outs, axis=0), h, c


def rnn_lstm_forward_ref(params, hidden_state, cell_state, captions):
  emb_table = params["embedding"]
  num_layers = params["num_layers"]
  num_dirs = 2 if params["bidirectional"] else 1
  x = jnp.take(emb_table, captions, axis=0)
  x = jnp.transpose(x, (1, 0, 2))
  h_finals, c_finals = [], []
  layer_in = x
  for layer in range(num_layers):
    dir_outs = []
    for d in range(num_dirs):
      idx = layer * num_dirs + d
      w_ih = params["w_ih"][layer][d]
      w_hh = params["w_hh"][layer][d]
      b = params["b"][layer][d]
      x_in = layer_in if d == 0 else layer_in[::-1]
      out, h_t, c_t = _lstm_layer_ref(x_in, hidden_state[idx],
                                      cell_state[idx], w_ih, w_hh, b)
      if d == 1:
        out = out[::-1]
      dir_outs.append(out)
      h_finals.append(h_t)
      c_finals.append(c_t)
    layer_in = jnp.concatenate(dir_outs, axis=-1)
  return (jnp.transpose(layer_in, (1, 0, 2)),
          (jnp.stack(h_finals, 0), jnp.stack(c_finals, 0)))


# ----------------------------------------------------------------------------
# Deterministic parameter construction (matches nn.LSTM shapes / init range).
# ----------------------------------------------------------------------------
def make_params(key, vocab_size, embed_dim, cell_size, num_layers,
                bidirectional):
  num_dirs = 2 if bidirectional else 1
  k_emb, key = jax.random.split(key)
  embedding = jax.random.normal(k_emb, (vocab_size, embed_dim), jnp.float32)

  bound = 1.0 / math.sqrt(cell_size)
  w_ih_layers, w_hh_layers, b_layers = [], [], []
  for layer in range(num_layers):
    d_in = embed_dim if layer == 0 else cell_size * num_dirs
    w_ih_d, w_hh_d, b_d = [], [], []
    for _ in range(num_dirs):
      key, k1, k2, k3, k4 = jax.random.split(key, 5)
      # Stored transposed relative to PyTorch (so kernels do x @ W).
      w_ih = jax.random.uniform(k1, (d_in, 4 * cell_size), jnp.float32,
                                -bound, bound)
      w_hh = jax.random.uniform(k2, (cell_size, 4 * cell_size), jnp.float32,
                                -bound, bound)
      b_ih = jax.random.uniform(k3, (4 * cell_size,), jnp.float32,
                                -bound, bound)
      b_hh = jax.random.uniform(k4, (4 * cell_size,), jnp.float32,
                                -bound, bound)
      w_ih_d.append(w_ih)
      w_hh_d.append(w_hh)
      b_d.append(b_ih + b_hh)
    w_ih_layers.append(jnp.stack(w_ih_d, axis=0))
    w_hh_layers.append(jnp.stack(w_hh_d, axis=0))
    b_layers.append(jnp.stack(b_d, axis=0))
  return {
      "embedding": embedding,
      "w_ih": w_ih_layers,
      "w_hh": w_hh_layers,
      "b": b_layers,
      "num_layers": num_layers,
      "bidirectional": bidirectional,
  }


if __name__ == "__main__":
  # bf16 matmul operands / bf16 activation streams -> loosened tolerances
  # (expected precision change, not a bug).
  ATOL = 5e-2
  RTOL = 5e-2

  # ---- Config A: bidirectional, 2 layers, small shapes --------------------
  batch = 2
  seq = 8
  vocab = 20
  embed_dim = 16
  cell_size = 32
  num_layers = 2
  bidirectional = True
  num_dirs = 2

  key = jax.random.PRNGKey(0)
  key, k_params, k_cap, k_h, k_c = jax.random.split(key, 5)
  params = make_params(k_params, vocab, embed_dim, cell_size, num_layers,
                       bidirectional)
  captions = jax.random.randint(k_cap, (batch, seq), 0, vocab, jnp.int32)
  hidden_state = 0.1 * jax.random.normal(
      k_h, (num_layers * num_dirs, batch, cell_size), jnp.float32)
  cell_state = 0.1 * jax.random.normal(
      k_c, (num_layers * num_dirs, batch, cell_size), jnp.float32)

  ref_out, (ref_h, ref_c) = rnn_lstm_forward_ref(params, hidden_state,
                                                 cell_state, captions)

  # Case 1: multi-time-block grid (time_block=4 -> 2 blocks), reversed
  # backward-direction index_map, no padding.
  outputs, (h_n, c_n) = rnn_lstm_forward(params, hidden_state, cell_state,
                                         captions, time_block=4)
  jax.block_until_ready((outputs, h_n, c_n))
  assert outputs.shape == (batch, seq, num_dirs * cell_size)
  assert h_n.shape == (num_layers * num_dirs, batch, cell_size)
  assert c_n.shape == (num_layers * num_dirs, batch, cell_size)
  assert jnp.allclose(outputs, ref_out, atol=ATOL, rtol=RTOL)
  assert jnp.allclose(h_n, ref_h, atol=ATOL, rtol=RTOL)
  assert jnp.allclose(c_n, ref_c, atol=ATOL, rtol=RTOL)

  # Case 2: time_block that does not divide T -> padded tail block, masked
  # loop only in that block (backward direction starts in the padded block).
  outputs2, (h_n2, c_n2) = rnn_lstm_forward(params, hidden_state, cell_state,
                                            captions, time_block=3)
  jax.block_until_ready((outputs2, h_n2, c_n2))
  assert jnp.allclose(outputs2, ref_out, atol=ATOL, rtol=RTOL)
  assert jnp.allclose(h_n2, ref_h, atol=ATOL, rtol=RTOL)
  assert jnp.allclose(c_n2, ref_c, atol=ATOL, rtol=RTOL)

  # ---- Config B: unidirectional, 1 layer, batch=32 -------------------------
  # Exercises the batch-block parallel grid axis (nb=2) and the VMEM-budget
  # derived time_block (time_block=None).
  batch_u, seq_u = 32, 6
  key, k_p2, k_cap2, k_h2, k_c2 = jax.random.split(key, 5)
  params_u = make_params(k_p2, vocab, embed_dim, cell_size, 1, False)
  captions_u = jax.random.randint(k_cap2, (batch_u, seq_u), 0, vocab, jnp.int32)
  h0_u = 0.1 * jax.random.normal(k_h2, (1, batch_u, cell_size), jnp.float32)
  c0_u = 0.1 * jax.random.normal(k_c2, (1, batch_u, cell_size), jnp.float32)

  ref_out_u, (ref_h_u, ref_c_u) = rnn_lstm_forward_ref(params_u, h0_u, c0_u,
                                                       captions_u)
  outputs3, (h_n3, c_n3) = rnn_lstm_forward(params_u, h0_u, c0_u, captions_u)
  jax.block_until_ready((outputs3, h_n3, c_n3))
  assert outputs3.shape == (batch_u, seq_u, cell_size)
  assert jnp.allclose(outputs3, ref_out_u, atol=ATOL, rtol=RTOL)
  assert jnp.allclose(h_n3, ref_h_u, atol=ATOL, rtol=RTOL)
  assert jnp.allclose(c_n3, ref_c_u, atol=ATOL, rtol=RTOL)

  print("KERNEL_OK")
</pallas_src>

<mosaic_0001>
module attributes {stable_mosaic.version = 11 : i64} {
  func.func @_lstm_dir_time_kernel(%arg0: i32, %arg1: i32, %arg2: i32, %arg3: memref<1x4x2x512xbf16, #tpu.memory_space<vmem>>, %arg4: memref<1x2x128xf32, #tpu.memory_space<vmem>>, %arg5: memref<1x2x128xf32, #tpu.memory_space<vmem>>, %arg6: memref<1x128x512xbf16, #tpu.memory_space<vmem>>, %arg7: memref<1x4x2x128xbf16, #tpu.memory_space<vmem>>, %arg8: memref<1x2x128xf32, #tpu.memory_space<vmem>>, %arg9: memref<1x2x128xf32, #tpu.memory_space<vmem>>, %arg10: memref<2x128xf32, #tpu.memory_space<vmem>>, %arg11: memref<2x128xf32, #tpu.memory_space<vmem>>) attributes {dimension_semantics = [#tpu.dimension_semantics<parallel>, #tpu.dimension_semantics<parallel>, #tpu.dimension_semantics<arbitrary>], iteration_bounds = array<i64: 2, 1, 2>, scalar_prefetch = 0 : i64, scratch_operands = 2 : i64, tpu.core_type = #tpu.core_type<tc>, window_params = [{transform_indices = @transform_0, window_bounds = array<i64: 1, 4, 2, 512>}, {transform_indices = @transform_1, window_bounds = array<i64: 1, 2, 128>}, {transform_indices = @transform_2, window_bounds = array<i64: 1, 2, 128>}, {transform_indices = @transform_3, window_bounds = array<i64: 1, 128, 512>}, {transform_indices = @transform_4, window_bounds = array<i64: 1, 4, 2, 128>}, {transform_indices = @transform_5, window_bounds = array<i64: 1, 2, 128>}, {transform_indices = @transform_6, window_bounds = array<i64: 1, 2, 128>}]} {
    %c0_i32 = arith.constant 0 : i32
    %0 = arith.cmpi eq, %arg0, %c0_i32 : i32
    %c0_i32_0 = arith.constant 0 : i32
    %1 = arith.cmpi eq, %arg2, %c0_i32_0 : i32
    %2 = arith.extui %1 : i1 to i32
    %c0_i32_1 = arith.constant 0 : i32
    %3 = arith.cmpi ne, %2, %c0_i32_1 : i32
    scf.if %3 {
      %c0_58 = arith.constant 0 : index
      %c0_59 = arith.constant 0 : index
      %c0_60 = arith.constant 0 : index
      %169 = vector.load %arg4[%c0_58, %c0_59, %c0_60] : memref<1x2x128xf32, #tpu.memory_space<vmem>>, vector<1x2x128xf32>
      %170 = vector.shape_cast %169 : vector<1x2x128xf32> to vector<2x128xf32>
      %c0_61 = arith.constant 0 : index
      %c0_62 = arith.constant 0 : index
      %171 = vector.load %arg10[%c0_61, %c0_62] : memref<2x128xf32, #tpu.memory_space<vmem>>, vector<2x128xf32>
      tpu.vector_store %arg10[%c0_61, %c0_62], %170 {strides = array<i32>} : memref<2x128xf32, #tpu.memory_space<vmem>>, vector<2x128xf32>,
      %c0_63 = arith.constant 0 : index
      %c0_64 = arith.constant 0 : index
      %c0_65 = arith.constant 0 : index
      %172 = vector.load %arg5[%c0_63, %c0_64, %c0_65] : memref<1x2x128xf32, #tpu.memory_space<vmem>>, vector<1x2x128xf32>
      %173 = vector.shape_cast %172 : vector<1x2x128xf32> to vector<2x128xf32>
      %c0_66 = arith.constant 0 : index
      %c0_67 = arith.constant 0 : index
      %174 = vector.load %arg11[%c0_66, %c0_67] : memref<2x128xf32, #tpu.memory_space<vmem>>, vector<2x128xf32>
      tpu.vector_store %arg11[%c0_66, %c0_67], %173 {strides = array<i32>} : memref<2x128xf32, #tpu.memory_space<vmem>>, vector<2x128xf32>,
    } else {
    }
    %c0 = arith.constant 0 : index
    %c0_2 = arith.constant 0 : index
    %c0_3 = arith.constant 0 : index
    %4 = vector.load %arg6[%c0, %c0_2, %c0_3] : memref<1x128x512xbf16, #tpu.memory_space<vmem>>, vector<1x128x512xbf16>
    %5 = vector.shape_cast %4 : vector<1x128x512xbf16> to vector<128x512xbf16>
    %c0_4 = arith.constant 0 : index
    %c0_5 = arith.constant 0 : index
    %6 = vector.load %arg10[%c0_4, %c0_5] : memref<2x128xf32, #tpu.memory_space<vmem>>, vector<2x128xf32>
    %c0_6 = arith.constant 0 : index
    %c0_7 = arith.constant 0 : index
    %7 = vector.load %arg11[%c0_6, %c0_7] : memref<2x128xf32, #tpu.memory_space<vmem>>, vector<2x128xf32>
    %c0_i32_8 = arith.constant 0 : i32
    %c3_i32 = arith.constant 3 : i32
    %8 = arith.subi %c3_i32, %c0_i32_8 : i32
    %9 = arith.select %0, %c0_i32_8, %8 : i32
    %c0_9 = arith.constant 0 : index
    %10 = arith.index_cast %9 : i32 to index
    %c0_10 = arith.constant 0 : index
    %c0_11 = arith.constant 0 : index
    %11 = vector.load %arg3[%c0_9, %10, %c0_10, %c0_11] : memref<1x4x2x512xbf16, #tpu.memory_space<vmem>>, vector<1x1x2x512xbf16>
    %12 = vector.shape_cast %11 : vector<1x1x2x512xbf16> to vector<2x512xbf16>
    %13 = arith.extf %12 : vector<2x512xbf16> to vector<2x512xf32>
    %14 = arith.truncf %6 : vector<2x128xf32> to vector<2x128xbf16>
    %cst = arith.constant dense<0.000000e+00> : vector<2x512xf32>
    %15 = tpu.matmul %14, %5, %cst {dimension_numbers = #tpu.dot_dimension_numbers<[1], [0], [0], [1], [0, 0, 1, 1], [], []>} : vector<2x128xbf16>, vector<128x512xbf16>, vector<2x512xf32> -> vector<2x512xf32>
    %16 = arith.addf %13, %15 : vector<2x512xf32>
    %17 = vector.extract_strided_slice %16 {offsets = [0, 0], sizes = [2, 128], strides = [1, 1]} : vector<2x512xf32> to vector<2x128xf32>
    %18 = arith.negf %17 : vector<2x128xf32>
    %19 = math.exp %18 : vector<2x128xf32>
    %cst_12 = arith.constant 1.000000e+00 : f32
    %20 = vector.broadcast %cst_12 : f32 to vector<2x128xf32>
    %21 = arith.addf %20, %19 : vector<2x128xf32>
    %22 = arith.divf %20, %21 : vector<2x128xf32>
    %23 = vector.extract_strided_slice %16 {offsets = [0, 128], sizes = [2, 128], strides = [1, 1]} : vector<2x512xf32> to vector<2x128xf32>
    %24 = arith.negf %23 : vector<2x128xf32>
    %25 = math.exp %24 : vector<2x128xf32>
    %cst_13 = arith.constant 1.000000e+00 : f32
    %26 = vector.broadcast %cst_13 : f32 to vector<2x128xf32>
    %27 = arith.addf %26, %25 : vector<2x128xf32>
    %28 = arith.divf %26, %27 : vector<2x128xf32>
    %29 = vector.extract_strided_slice %16 {offsets = [0, 256], sizes = [2, 128], strides = [1, 1]} : vector<2x512xf32> to vector<2x128xf32>
    %30 = math.tanh %29 : vector<2x128xf32>
    %31 = vector.extract_strided_slice %16 {offsets = [0, 384], sizes = [2, 128], strides = [1, 1]} : vector<2x512xf32> to vector<2x128xf32>
    %32 = arith.negf %31 : vector<2x128xf32>
    %33 = math.exp %32 : vector<2x128xf32>
    %cst_14 = arith.constant 1.000000e+00 : f32
    %34 = vector.broadcast %cst_14 : f32 to vector<2x128xf32>
    %35 = arith.addf %34, %33 : vector<2x128xf32>
    %36 = arith.divf %34, %35 : vector<2x128xf32>
    %37 = arith.mulf %28, %7 : vector<2x128xf32>
    %38 = arith.mulf %22, %30 : vector<2x128xf32>
    %39 = arith.addf %37, %38 : vector<2x128xf32>
    %40 = math.tanh %39 : vector<2x128xf32>
    %41 = arith.mulf %36, %40 : vector<2x128xf32>
    %42 = arith.truncf %41 : vector<2x128xf32> to vector<2x128xbf16>
    %c0_15 = arith.constant 0 : index
    %43 = arith.index_cast %9 : i32 to index
    %c0_16 = arith.constant 0 : index
    %c0_17 = arith.constant 0 : index
    %44 = vector.load %arg7[%c0_15, %43, %c0_16, %c0_17] : memref<1x4x2x128xbf16, #tpu.memory_space<vmem>>, vector<1x1x2x128xbf16>
    %45 = vector.shape_cast %44 : vector<1x1x2x128xbf16> to vector<2x128xbf16>
    %46 = vector.shape_cast %42 : vector<2x128xbf16> to vector<1x1x2x128xbf16>
    tpu.vector_store %arg7[%c0_15, %43, %c0_16, %c0_17], %46 {strides = array<i32>} : memref<1x4x2x128xbf16, #tpu.memory_space<vmem>>, vector<1x1x2x128xbf16>,
    %c1_i32 = arith.constant 1 : i32
    %c3_i32_18 = arith.constant 3 : i32
    %47 = arith.subi %c3_i32_18, %c1_i32 : i32
    %48 = arith.select %0, %c1_i32, %47 : i32
    %c0_19 = arith.constant 0 : index
    %49 = arith.index_cast %48 : i32 to index
    %c0_20 = arith.constant 0 : index
    %c0_21 = arith.constant 0 : index
    %50 = vector.load %arg3[%c0_19, %49, %c0_20, %c0_21] : memref<1x4x2x512xbf16, #tpu.memory_space<vmem>>, vector<1x1x2x512xbf16>
    %51 = vector.shape_cast %50 : vector<1x1x2x512xbf16> to vector<2x512xbf16>
    %52 = arith.extf %51 : vector<2x512xbf16> to vector<2x512xf32>
    %53 = arith.truncf %41 : vector<2x128xf32> to vector<2x128xbf16>
    %cst_22 = arith.constant dense<0.000000e+00> : vector<2x512xf32>
    %54 = tpu.matmul %53, %5, %cst_22 {dimension_numbers = #tpu.dot_dimension_numbers<[1], [0], [0], [1], [0, 0, 1, 1], [], []>} : vector<2x128xbf16>, vector<128x512xbf16>, vector<2x512xf32> -> vector<2x512xf32>
    %55 = arith.addf %52, %54 : vector<2x512xf32>
    %56 = vector.extract_strided_slice %55 {offsets = [0, 0], sizes = [2, 128], strides = [1, 1]} : vector<2x512xf32> to vector<2x128xf32>
    %57 = arith.negf %56 : vector<2x128xf32>
    %58 = math.exp %57 : vector<2x128xf32>
    %cst_23 = arith.constant 1.000000e+00 : f32
    %59 = vector.broadcast %cst_23 : f32 to vector<2x128xf32>
    %60 = arith.addf %59, %58 : vector<2x128xf32>
    %61 = arith.divf %59, %60 : vector<2x128xf32>
    %62 = vector.extract_strided_slice %55 {offsets = [0, 128], sizes = [2, 128], strides = [1, 1]} : vector<2x512xf32> to vector<2x128xf32>
    %63 = arith.negf %62 : vector<2x128xf32>
    %64 = math.exp %63 : vector<2x128xf32>
    %cst_24 = arith.constant 1.000000e+00 : f32
    %65 = vector.broadcast %cst_24 : f32 to vector<2x128xf32>
    %66 = arith.addf %65, %64 : vector<2x128xf32>
    %67 = arith.divf %65, %66 : vector<2x128xf32>
    %68 = vector.extract_strided_slice %55 {offsets = [0, 256], sizes = [2, 128], strides = [1, 1]} : vector<2x512xf32> to vector<2x128xf32>
    %69 = math.tanh %68 : vector<2x128xf32>
    %70 = vector.extract_strided_slice %55 {offsets = [0, 384], sizes = [2, 128], strides = [1, 1]} : vector<2x512xf32> to vector<2x128xf32>
    %71 = arith.negf %70 : vector<2x128xf32>
    %72 = math.exp %71 : vector<2x128xf32>
    %cst_25 = arith.constant 1.000000e+00 : f32
    %73 = vector.broadcast %cst_25 : f32 to vector<2x128xf32>
    %74 = arith.addf %73, %72 : vector<2x128xf32>
    %75 = arith.divf %73, %74 : vector<2x128xf32>
    %76 = arith.mulf %67, %39 : vector<2x128xf32>
    %77 = arith.mulf %61, %69 : vector<2x128xf32>
    %78 = arith.addf %76, %77 : vector<2x128xf32>
    %79 = math.tanh %78 : vector<2x128xf32>
    %80 = arith.mulf %75, %79 : vector<2x128xf32>
    %81 = arith.truncf %80 : vector<2x128xf32> to vector<2x128xbf16>
    %c0_26 = arith.constant 0 : index
    %82 = arith.index_cast %48 : i32 to index
    %c0_27 = arith.constant 0 : index
    %c0_28 = arith.constant 0 : index
    %83 = vector.load %arg7[%c0_26, %82, %c0_27, %c0_28] : memref<1x4x2x128xbf16, #tpu.memory_space<vmem>>, vector<1x1x2x128xbf16>
    %84 = vector.shape_cast %83 : vector<1x1x2x128xbf16> to vector<2x128xbf16>
    %85 = vector.shape_cast %81 : vector<2x128xbf16> to vector<1x1x2x128xbf16>
    tpu.vector_store %arg7[%c0_26, %82, %c0_27, %c0_28], %85 {strides = array<i32>} : memref<1x4x2x128xbf16, #tpu.memory_space<vmem>>, vector<1x1x2x128xbf16>,
    %c2_i32 = arith.constant 2 : i32
    %c3_i32_29 = arith.constant 3 : i32
    %86 = arith.subi %c3_i32_29, %c2_i32 : i32
    %87 = arith.select %0, %c2_i32, %86 : i32
    %c0_30 = arith.constant 0 : index
    %88 = arith.index_cast %87 : i32 to index
    %c0_31 = arith.constant 0 : index
    %c0_32 = arith.constant 0 : index
    %89 = vector.load %arg3[%c0_30, %88, %c0_31, %c0_32] : memref<1x4x2x512xbf16, #tpu.memory_space<vmem>>, vector<1x1x2x512xbf16>
    %90 = vector.shape_cast %89 : vector<1x1x2x512xbf16> to vector<2x512xbf16>
    %91 = arith.extf %90 : vector<2x512xbf16> to vector<2x512xf32>
    %92 = arith.truncf %80 : vector<2x128xf32> to vector<2x128xbf16>
    %cst_33 = arith.constant dense<0.000000e+00> : vector<2x512xf32>
    %93 = tpu.matmul %92, %5, %cst_33 {dimension_numbers = #tpu.dot_dimension_numbers<[1], [0], [0], [1], [0, 0, 1, 1], [], []>} : vector<2x128xbf16>, vector<128x512xbf16>, vector<2x512xf32> -> vector<2x512xf32>
    %94 = arith.addf %91, %93 : vector<2x512xf32>
    %95 = vector.extract_strided_slice %94 {offsets = [0, 0], sizes = [2, 128], strides = [1, 1]} : vector<2x512xf32> to vector<2x128xf32>
    %96 = arith.negf %95 : vector<2x128xf32>
    %97 = math.exp %96 : vector<2x128xf32>
    %cst_34 = arith.constant 1.000000e+00 : f32
    %98 = vector.broadcast %cst_34 : f32 to vector<2x128xf32>
    %99 = arith.addf %98, %97 : vector<2x128xf32>
    %100 = arith.divf %98, %99 : vector<2x128xf32>
    %101 = vector.extract_strided_slice %94 {offsets = [0, 128], sizes = [2, 128], strides = [1, 1]} : vector<2x512xf32> to vector<2x128xf32>
    %102 = arith.negf %101 : vector<2x128xf32>
    %103 = math.exp %102 : vector<2x128xf32>
    %cst_35 = arith.constant 1.000000e+00 : f32
    %104 = vector.broadcast %cst_35 : f32 to vector<2x128xf32>
    %105 = arith.addf %104, %103 : vector<2x128xf32>
    %106 = arith.divf %104, %105 : vector<2x128xf32>
    %107 = vector.extract_strided_slice %94 {offsets = [0, 256], sizes = [2, 128], strides = [1, 1]} : vector<2x512xf32> to vector<2x128xf32>
    %108 = math.tanh %107 : vector<2x128xf32>
    %109 = vector.extract_strided_slice %94 {offsets = [0, 384], sizes = [2, 128], strides = [1, 1]} : vector<2x512xf32> to vector<2x128xf32>
    %110 = arith.negf %109 : vector<2x128xf32>
    %111 = math.exp %110 : vector<2x128xf32>
    %cst_36 = arith.constant 1.000000e+00 : f32
    %112 = vector.broadcast %cst_36 : f32 to vector<2x128xf32>
    %113 = arith.addf %112, %111 : vector<2x128xf32>
    %114 = arith.divf %112, %113 : vector<2x128xf32>
    %115 = arith.mulf %106, %78 : vector<2x128xf32>
    %116 = arith.mulf %100, %108 : vector<2x128xf32>
    %117 = arith.addf %115, %116 : vector<2x128xf32>
    %118 = math.tanh %117 : vector<2x128xf32>
    %119 = arith.mulf %114, %118 : vector<2x128xf32>
    %120 = arith.truncf %119 : vector<2x128xf32> to vector<2x128xbf16>
    %c0_37 = arith.constant 0 : index
    %121 = arith.index_cast %87 : i32 to index
    %c0_38 = arith.constant 0 : index
    %c0_39 = arith.constant 0 : index
    %122 = vector.load %arg7[%c0_37, %121, %c0_38, %c0_39] : memref<1x4x2x128xbf16, #tpu.memory_space<vmem>>, vector<1x1x2x128xbf16>
    %123 = vector.shape_cast %122 : vector<1x1x2x128xbf16> to vector<2x128xbf16>
    %124 = vector.shape_cast %120 : vector<2x128xbf16> to vector<1x1x2x128xbf16>
    tpu.vector_store %arg7[%c0_37, %121, %c0_38, %c0_39], %124 {strides = array<i32>} : memref<1x4x2x128xbf16, #tpu.memory_space<vmem>>, vector<1x1x2x128xbf16>,
    %c3_i32_40 = arith.constant 3 : i32
    %c3_i32_41 = arith.constant 3 : i32
    %125 = arith.subi %c3_i32_41, %c3_i32_40 : i32
    %126 = arith.select %0, %c3_i32_40, %125 : i32
    %c0_42 = arith.constant 0 : index
    %127 = arith.index_cast %126 : i32 to index
    %c0_43 = arith.constant 0 : index
    %c0_44 = arith.constant 0 : index
    %128 = vector.load %arg3[%c0_42, %127, %c0_43, %c0_44] : memref<1x4x2x512xbf16, #tpu.memory_space<vmem>>, vector<1x1x2x512xbf16>
    %129 = vector.shape_cast %128 : vector<1x1x2x512xbf16> to vector<2x512xbf16>
    %130 = arith.extf %129 : vector<2x512xbf16> to vector<2x512xf32>
    %131 = arith.truncf %119 : vector<2x128xf32> to vector<2x128xbf16>
    %cst_45 = arith.constant dense<0.000000e+00> : vector<2x512xf32>
    %132 = tpu.matmul %131, %5, %cst_45 {dimension_numbers = #tpu.dot_dimension_numbers<[1], [0], [0], [1], [0, 0, 1, 1], [], []>} : vector<2x128xbf16>, vector<128x512xbf16>, vector<2x512xf32> -> vector<2x512xf32>
    %133 = arith.addf %130, %132 : vector<2x512xf32>
    %134 = vector.extract_strided_slice %133 {offsets = [0, 0], sizes = [2, 128], strides = [1, 1]} : vector<2x512xf32> to vector<2x128xf32>
    %135 = arith.negf %134 : vector<2x128xf32>
    %136 = math.exp %135 : vector<2x128xf32>
    %cst_46 = arith.constant 1.000000e+00 : f32
    %137 = vector.broadcast %cst_46 : f32 to vector<2x128xf32>
    %138 = arith.addf %137, %136 : vector<2x128xf32>
    %139 = arith.divf %137, %138 : vector<2x128xf32>
    %140 = vector.extract_strided_slice %133 {offsets = [0, 128], sizes = [2, 128], strides = [1, 1]} : vector<2x512xf32> to vector<2x128xf32>
    %141 = arith.negf %140 : vector<2x128xf32>
    %142 = math.exp %141 : vector<2x128xf32>
    %cst_47 = arith.constant 1.000000e+00 : f32
    %143 = vector.broadcast %cst_47 : f32 to vector<2x128xf32>
    %144 = arith.addf %143, %142 : vector<2x128xf32>
    %145 = arith.divf %143, %144 : vector<2x128xf32>
    %146 = vector.extract_strided_slice %133 {offsets = [0, 256], sizes = [2, 128], strides = [1, 1]} : vector<2x512xf32> to vector<2x128xf32>
    %147 = math.tanh %146 : vector<2x128xf32>
    %148 = vector.extract_strided_slice %133 {offsets = [0, 384], sizes = [2, 128], strides = [1, 1]} : vector<2x512xf32> to vector<2x128xf32>
    %149 = arith.negf %148 : vector<2x128xf32>
    %150 = math.exp %149 : vector<2x128xf32>
    %cst_48 = arith.constant 1.000000e+00 : f32
    %151 = vector.broadcast %cst_48 : f32 to vector<2x128xf32>
    %152 = arith.addf %151, %150 : vector<2x128xf32>
    %153 = arith.divf %151, %152 : vector<2x128xf32>
    %154 = arith.mulf %145, %117 : vector<2x128xf32>
    %155 = arith.mulf %139, %147 : vector<2x128xf32>
    %156 = arith.addf %154, %155 : vector<2x128xf32>
    %157 = math.tanh %156 : vector<2x128xf32>
    %158 = arith.mulf %153, %157 : vector<2x128xf32>
    %159 = arith.truncf %158 : vector<2x128xf32> to vector<2x128xbf16>
    %c0_49 = arith.constant 0 : index
    %160 = arith.index_cast %126 : i32 to index
    %c0_50 = arith.constant 0 : index
    %c0_51 = arith.constant 0 : index
    %161 = vector.load %arg7[%c0_49, %160, %c0_50, %c0_51] : memref<1x4x2x128xbf16, #tpu.memory_space<vmem>>, vector<1x1x2x128xbf16>
    %162 = vector.shape_cast %161 : vector<1x1x2x128xbf16> to vector<2x128xbf16>
    %163 = vector.shape_cast %159 : vector<2x128xbf16> to vector<1x1x2x128xbf16>
    tpu.vector_store %arg7[%c0_49, %160, %c0_50, %c0_51], %163 {strides = array<i32>} : memref<1x4x2x128xbf16, #tpu.memory_space<vmem>>, vector<1x1x2x128xbf16>,
    %c4_i32 = arith.constant 4 : i32
    %c0_52 = arith.constant 0 : index
    %c0_53 = arith.constant 0 : index
    %164 = vector.load %arg10[%c0_52, %c0_53] : memref<2x128xf32, #tpu.memory_space<vmem>>, vector<2x128xf32>
    tpu.vector_store %arg10[%c0_52, %c0_53], %158 {strides = array<i32>} : memref<2x128xf32, #tpu.memory_space<vmem>>, vector<2x128xf32>,
    %c0_54 = arith.constant 0 : index
    %c0_55 = arith.constant 0 : index
    %165 = vector.load %arg11[%c0_54, %c0_55] : memref<2x128xf32, #tpu.memory_space<vmem>>, vector<2x128xf32>
    tpu.vector_store %arg11[%c0_54, %c0_55], %156 {strides = array<i32>} : memref<2x128xf32, #tpu.memory_space<vmem>>, vector<2x128xf32>,
    %c1_i32_56 = arith.constant 1 : i32
    %166 = arith.cmpi eq, %arg2, %c1_i32_56 : i32
    %167 = arith.extui %166 : i1 to i32
    %c0_i32_57 = arith.constant 0 : i32
    %168 = arith.cmpi ne, %167, %c0_i32_57 : i32
    scf.if %168 {
      %c0_58 = arith.constant 0 : index
      %c0_59 = arith.constant 0 : index
      %c0_60 = arith.constant 0 : index
      %169 = vector.load %arg8[%c0_58, %c0_59, %c0_60] : memref<1x2x128xf32, #tpu.memory_space<vmem>>, vector<1x2x128xf32>
      %170 = vector.shape_cast %169 : vector<1x2x128xf32> to vector<2x128xf32>
      %171 = vector.shape_cast %158 : vector<2x128xf32> to vector<1x2x128xf32>
      tpu.vector_store %arg8[%c0_58, %c0_59, %c0_60], %171 {strides = array<i32>} : memref<1x2x128xf32, #tpu.memory_space<vmem>>, vector<1x2x128xf32>,
      %c0_61 = arith.constant 0 : index
      %c0_62 = arith.constant 0 : index
      %c0_63 = arith.constant 0 : index
      %172 = vector.load %arg9[%c0_61, %c0_62, %c0_63] : memref<1x2x128xf32, #tpu.memory_space<vmem>>, vector<1x2x128xf32>
      %173 = vector.shape_cast %172 : vector<1x2x128xf32> to vector<2x128xf32>
      %174 = vector.shape_cast %156 : vector<2x128xf32> to vector<1x2x128xf32>
      tpu.vector_store %arg9[%c0_61, %c0_62, %c0_63], %174 {strides = array<i32>} : memref<1x2x128xf32, #tpu.memory_space<vmem>>, vector<1x2x128xf32>,
    } else {
    }
    return
  }
  func.func @transform_0(%arg0: i32, %arg1: i32, %arg2: i32) -> (i32, i32, i32, i32) {
    %c0_i32 = arith.constant 0 : i32
    %0 = arith.cmpi eq, %arg0, %c0_i32 : i32
    %c1_i32 = arith.constant 1 : i32
    %1 = arith.subi %c1_i32, %arg2 : i32
    %2 = arith.select %0, %arg2, %1 : i32
    %c0_i32_0 = arith.constant 0 : i32
    %c0_i32_1 = arith.constant 0 : i32
    return %arg0, %2, %arg1, %c0_i32_0 : i32, i32, i32, i32
  }
  func.func @transform_1(%arg0: i32, %arg1: i32, %arg2: i32) -> (i32, i32, i32) {
    %c0_i32 = arith.constant 0 : i32
    %c0_i32_0 = arith.constant 0 : i32
    return %arg0, %arg1, %c0_i32 : i32, i32, i32
  }
  func.func @transform_2(%arg0: i32, %arg1: i32, %arg2: i32) -> (i32, i32, i32) {
    %c0_i32 = arith.constant 0 : i32
    %c0_i32_0 = arith.constant 0 : i32
    return %arg0, %arg1, %c0_i32 : i32, i32, i32
  }
  func.func @transform_3(%arg0: i32, %arg1: i32, %arg2: i32) -> (i32, i32, i32) {
    %c0_i32 = arith.constant 0 : i32
    %c0_i32_0 = arith.constant 0 : i32
    %c0_i32_1 = arith.constant 0 : i32
    return %arg0, %c0_i32, %c0_i32_0 : i32, i32, i32
  }
  func.func @transform_4(%arg0: i32, %arg1: i32, %arg2: i32) -> (i32, i32, i32, i32) {
    %c0_i32 = arith.constant 0 : i32
    %0 = arith.cmpi eq, %arg0, %c0_i32 : i32
    %c1_i32 = arith.constant 1 : i32
    %1 = arith.subi %c1_i32, %arg2 : i32
    %2 = arith.select %0, %arg2, %1 : i32
    %c0_i32_0 = arith.constant 0 : i32
    %c0_i32_1 = arith.constant 0 : i32
    return %arg0, %2, %arg1, %c0_i32_0 : i32, i32, i32, i32
  }
  func.func @transform_5(%arg0: i32, %arg1: i32, %arg2: i32) -> (i32, i32, i32) {
    %c0_i32 = arith.constant 0 : i32
    %c0_i32_0 = arith.constant 0 : i32
    return %arg0, %arg1, %c0_i32 : i32, i32, i32
  }
  func.func @transform_6(%arg0: i32, %arg1: i32, %arg2: i32) -> (i32, i32, i32) {
    %c0_i32 = arith.constant 0 : i32
    %c0_i32_0 = arith.constant 0 : i32
    return %arg0, %arg1, %c0_i32 : i32, i32, i32
  }
}

</mosaic_0001>

<bundles_post_ra>
// kernel: tpu_custom_call.1
= control target key start
LH: loop header
LB: loop body
LE: loop exit
PB: predicated region body
PF: predicated region fallthrough
CT: control target
= control target key end

     0   :  { %s2967_s0 = inlined_call_operand.hbm [shape: bf16[2,8,2,512], index: 0, kind: input, shape index: {}]   ;;  %s2968_s1 = inlined_call_operand.hbm [shape: f32[2,2,128], index: 1, kind: input, shape index: {}]   ;;  %s2969_s2 = inlined_call_operand.hbm [shape: f32[2,2,128], index: 2, kind: input, shape index: {}]   ;;  %s2970_s3 = inlined_call_operand.hbm [shape: bf16[2,128,512], index: 3, kind: input, shape index: {}]   ;;  %s2971_s4 = inlined_call_operand.hbm [shape: bf16[2,8,2,128], index: 4, kind: output, shape index: {0}]   ;;  %s2972_s5 = inlined_call_operand.hbm [shape: f32[2,2,128], index: 5, kind: output, shape index: {1}]   ;;  %s2973_s6 = inlined_call_operand.hbm [shape: f32[2,2,128], index: 6, kind: output, shape index: {2}]  }
   0x1   :  { %3005 = sst [smem:[#allocation37_spill]] %s2967_s0 }
   0x2   :  { %3006 = sst [smem:[#allocation38_spill]] %s2968_s1 }
   0x3   :  { %3007 = sst [smem:[#allocation39_spill]] %s2969_s2 }
   0x4   :  { %3008 = sst [smem:[#allocation40_spill]] %s2970_s3 }
   0x5   :  { %3009 = sst [smem:[#allocation41_spill]] %s2971_s4 }
   0x6   :  { %3010 = sst [smem:[#allocation42_spill]] %s2972_s5 }
   0x7   :  { %3011 = sst [smem:[#allocation43_spill]] %s2973_s6 }
   0x8   :  { %12 = vsyncpa [#allocation5], 0 }
   0x9   :  { %14 = vsyncpa [#allocation5 + $0x1], 0 }
   0xa   :  { %15 = vsyncpa [#allocation8], 0 }
   0xb   :  { %17 = vsyncpa [#allocation8 + $0x1], 0 }
   0xc   :  { %18 = vsyncpa [#allocation11], 0 }
   0xd   :  { %20 = vsyncpa [#allocation11 + $0x1], 0 }
   0xe   :  { %21 = vsyncpa [#allocation6], 0 }
   0xf   :  { %23 = vsyncpa [#allocation6 + $0x1], 0 }
  0x10   :  { %24 = vsyncpa [#allocation14], 0 }
  0x11   :  { %26 = vsyncpa [#allocation14 + $0x1], 0  ;;  %s2316_s21 = smov 0   ;;  %s2318_s22 = smov 0  }
  0x12   :  { %s2320_s23 = smov 0   ;;  %s2322_s24 = smov 0  }
  0x13   :  { %s2324_s25 = smov 0   ;;  %s2326_s26 = smov 0  }
  0x14   :  { %s2328_s27 = smov 0   ;;  %s2330_s28 = smov 0  }
  0x15   :  { %s2332_s29 = smov 0   ;;  %s2334_s30 = smov 0  }
  0x16   :  { %s2336_s7 = smov 0  }
  0x17 LB: > { %3012 = sst [smem:[#allocation21_spill]] %s2237_s22  ;;  %s2370_s8 = sadd.s32 4294967295, %s2273_s7   ;;  %s2273_s7 = sphi %s2336_s7, %s3078_s7   ;;  %s2269_s30 = sphi %s2334_s30, %s3072_s30   ;;  %s2265_s29 = sphi %s2332_s29, %s3071_s29   ;;  %s2261_s28 = sphi %s2330_s28, %s3070_s28   ;;  %s2257_s27 = sphi %s2328_s27, %s3069_s27   ;;  %s2253_s26 = sphi %s2326_s26, %s3077_s26   ;;  %s2249_s25 = sphi %s2324_s25, %s3076_s25   ;;  %s2245_s24 = sphi %s2322_s24, %s3075_s24   ;;  %s2241_s23 = sphi %s2320_s23, %s3074_s23   ;;  %s2237_s22 = sphi %s2318_s22, %s3073_s22   ;;  %s2233_s21 = sphi %s2316_s21, %s3068_s21  }
  0x18   : > { %3013 = sst [smem:[#allocation22_spill]] %s2245_s24  ;;  %s2975_s9 = sadd.s32 4294967294, %s2273_s7  }
  0x19   : > { %3014 = sst [smem:[#allocation23_spill]] %s2257_s27  ;;  %p75_p0 = scmp.ne.s32.totalorder %s2253_s26, %s2249_s25 }
  0x1a   : > { %3015 = sst [smem:[#allocation24_spill]] %s2261_s28  ;;  %p76_p1 = scmp.eq.s32.totalorder %s2273_s7, 0 }
  0x1b   : > { %3016 = sst [smem:[#allocation25_spill]] %s2265_s29  ;;  %p81_p2 = scmp.ne.s32.totalorder %s2249_s25, %s2245_s24 }
  0x1c   : > { %3017 = sst [smem:[#allocation26_spill]] %s2269_s30  ;;  %p82_p3 = scmp.eq.s32.totalorder %s2370_s8, 0 }
  0x1d   : > { %3018 = sst [smem:[#allocation27_spill]] %s2273_s7  ;;  %p2382_p4 = por %p76_p1, %p75_p0 }
  0x1e   : > { %3019 = sst [smem:[#allocation28_spill]] %s2370_s8  ;;  %p2387_p5 = por %p82_p3, %p81_p2 }
  0x1f   : > { %p103_p6 = scmp.ne.s32.totalorder %s2241_s23, %s2237_s22  ;;  %p109_p7 = scmp.ne.s32.totalorder %s2237_s22, %s2233_s21 }
  0x20   : > { %s3021_s12 = scalar_select %p2387_p5, 1, 0 }
  0x21   : > { %p197_p8 = scmp.eq.s32.totalorder %s2370_s8, 3  ;;  %p2395_p9 = por %p103_p6, %p76_p1 }
  0x22   : > { %3022 = sst [smem:[#allocation29_spill]] %s3021_s12  ;;  %p203_p10 = scmp.eq.s32.totalorder %s2975_s9, 3 }
  0x23   : > { %p2401_p11 = por %p109_p7, %p82_p3  ;;  %p2408_p12 = por %p197_p8, %p75_p0 }
  0x24   : > { %p2412_p13 = por %p203_p10, %p81_p2  ;;  %p2416_p1 = por %p197_p8, %p103_p6 }
  0x25   : > { %s3024_s14 = scalar_select %p2401_p11, 1, 0 }
  0x26   : > { %s3026_s15 = scalar_select %p2408_p12, 1, 0 }
  0x27   : > { %3025 = sst [smem:[#allocation30_spill]] %s3024_s14  ;;  %p2420_p5 = por %p203_p10, %p109_p7 }
  0x28   : > { %3027 = sst [smem:[#allocation31_spill]] %s3026_s15  ;;  %p1803_p3 = scmp.lt.s32.totalorder %s2273_s7, 4 }
  0x29   : > { %s3028_s16 = scalar_select %p2412_p13, 1, 0 }
  0x2a   : > { %s3030_s17 = scalar_select %p2416_p1, 1, 0 }
  0x2b   : > { %3029 = sst [smem:[#allocation32_spill]] %s3028_s16  ;;  %s308_s19 = sand.u32 1, %s2273_s7  }
  0x2c   : > { %3031 = sst [smem:[#allocation33_spill]] %s3030_s17  ;;  %s2427_s20 = sand.u32 1, %s2241_s23  }
  0x2d   : > { %s3032_s18 = scalar_select %p2420_p5, 1, 0 }
  0x2e   : > { %p2431_p0 = pnand %p1803_p3, %p2382_p4  ;;  %s2986_s9 = sshll.u32 %s2427_s20, 1 }
  0x2f   : > { %3033 = sst [smem:[#allocation34_spill]] %s3032_s18  ;;  %s1563_s11 = sshll.u32 %s2269_s30, 1 }
  0x30   : > { %s3035_s1 = sld [smem:[#allocation38_spill]]  ;;  %s312_s4 = scalar_lea.vmem [#allocation7], %s2986_s9 }
  0x31   : > { %s321_s10 = sshll.u32 %s312_s4, 4  ;;  %p2444_p2 = pnand %p1803_p3, %p2395_p9  ;;  %s322_s10 = int_to_ptr.vmem [resolvable:$true] %s321_s10 }
  0x32   : > { %s3037_s2 = sld [smem:[#allocation39_spill]]  ;;  %p1569_p4 = scmp.ge.s32.totalorder %s2273_s7, 1 }
  0x33   : > { %p368_p6 = scmp.lt.s32.totalorder %s2273_s7, 5  ;;  %s2455_s4 = scalar_lea.sflag [#allocation8], %s308_s19 }
  0x34   : > { %s44_s16 = sadd.s32 1, %s2265_s29  ;;  %s51_s5 = sadd.s32 1, %s2269_s30 }
  0x35   : > { %p2460_p7 = pnand %p1569_p4, %p368_p6  ;;  %p45_p8 = scmp.ge.s32.totalorder %s44_s16, 2 }
  0x36   : > { %s317_s18 = scalar_lea.hbm %s3035_s1, %s1563_s11  ;;  %p55_p9 = scmp.eq.s32.totalorder %s2269_s30, 0 }
  0x37   : > { %s319_s6 = sshll.u32 %s317_s18, 4  ;;  %s3080_s16 = smov (%p45_p8, %s44_s16), 0  ;;  %s320_s6 = int_to_ptr.hbm [resolvable:$true] %s319_s6 }
  0x38   : > { %s2451_s24 = scalar_lea.hbm %s3037_s2, %s1563_s11  ;;  %s56_s11 = ssub.s32 1, %s2265_s29 }
  0x39   : > { %1786 = dma.hbm_to_vmem [thread:$0]  (!%p2444_p2), %s320_s6, 32, %s322_s10, %s2455_s4  }
  0x3a   : > { %3039 = sst [smem:[#allocation35_spill]] %s3080_s16  ;;  %s3082_s5 = smov (!%p45_p8, %s51_s5), %s2269_s30 }
  0x3b   : > { %s57_s17 = scalar_select %p55_p9, %s2265_s29, %s56_s11 }
  0x3c   : > { %p53_p10 = scmp.ge.s32.totalorder %s3082_s5, 2  ;;  %s59_s6 = ssub.s32 1, %s3080_s16 }
  0x3d   : > { %s68_s18 = sadd.s32 1, %s2253_s26  ;;  %s279_s19 = sand.u32 1, %s2253_s26  }
  0x3e   : > { %s3084_s5 = smov (%p53_p10, %s3082_s5), 0  ;;  %s1558_s10 = sshll.u32 %s279_s19, 4 }
  0x3f   : > { %3040 = sst [smem:[#allocation36_spill]] %s3084_s5  ;;  %p58_p3 = scmp.eq.s32.totalorder %s3084_s5, 0 }
  0x40   : > { %s61_s9 = ssub.s32 %s2269_s30, %s3084_s5  ;;  %s3041_s2 = sadd.s32 1, %s2241_s23 }
  0x41   : > { %p94_p4 = scmp.eq.s32.totalorder %s61_s9, 0  ;;  %s1732_s11 = sshll.u32 %s57_s17, 4 }
  0x42   : > { %s60_s1 = scalar_select %p58_p3, %s3080_s16, %s59_s6 }
  0x43   : > { %s2484_s7 = scalar_select %p94_p4, %s2241_s23, %s3041_s2  }
  0x44   : > { %s62_s27 = ssub.s32 %s57_s17, %s60_s1  ;;  %s1561_s28 = sshll.u32 %s2269_s30, 5 }
  0x45   : > { %s63_s29 = sor.u32 %s62_s27, %s61_s9  ;;  %s294_s14 = sadd.s32 %s1732_s11, %s1561_s28 }
  0x46   : > { %p66_p6 = scmp.eq.s32.totalorder %s63_s29, 0  ;;  %s3042_s0 = sld [smem:[#allocation37_spill]] }
  0x47   : > { %s283_s5 = scalar_lea.vmem [#allocation4], %s1558_s10  ;;  %s339_s27 = sshll.u32 %s2451_s24, 4  ;;  %s340_s27 = int_to_ptr.hbm [resolvable:$true] %s339_s27 }
  0x48   : > { %s298_s6 = sshll.u32 %s283_s5, 4  ;;  %s280_s9 = scalar_lea.sflag [#allocation5], %s279_s19  ;;  %s299_s6 = int_to_ptr.vmem [resolvable:$true] %s298_s6 }
  0x49   : > { %s2491_s2 = scalar_select %p66_p6, %s2253_s26, %s68_s18  }
  0x4a   : > { %s2275_s17 = smov 64   ;;  %s2276_s28 = smov 4  }
  0x4b   : > { %s3043_s22 = sshll.u32 %s2427_s20, 1  ;;  %s1733_s5 = sshll.u32 %s2269_s30, 8 }
  0x4c   : > { %s295_s12 = scalar_lea.hbm %s3042_s0, %s294_s14  ;;  %s332_s29 = scalar_lea.vmem [#allocation9], %s3043_s22 }
  0x4d   : > { %s296_s1 = sshll.u32 %s295_s12, 4  ;;  %s341_s8 = sshll.u32 %s332_s29, 4  ;;  %s297_s1 = int_to_ptr.hbm [resolvable:$true] %s296_s1  ;;  %s342_s8 = int_to_ptr.vmem [resolvable:$true] %s341_s8 }
  0x4e   : > { %1783 = dma.hbm_to_vmem [thread:$0]  (!%p2431_p0), %s297_s1, 256, %s299_s6, %s280_s9, %s2275_s17, %s2275_s17, %s2276_s28  }
  0x4f   : > { %1789 = dma.hbm_to_vmem [thread:$0]  (!%p2444_p2), %s340_s27, 32, %s342_s8, %s2455_s4  }
  0x50   : > { %s1566_s14 = sshll.u32 %s2427_s20, 8  ;;  %s3044_s3 = sld [smem:[#allocation40_spill]] }
  0x51   : > { %s352_s10 = scalar_lea.vmem [#allocation10], %s1566_s14  ;;  %s349_s21 = scalar_lea.sflag [#allocation11], %s2427_s20 }
  0x52   : > { %s360_s11 = sshll.u32 %s352_s10, 4  ;;  %s2277_s6 = smov 256   ;;  %s361_s11 = int_to_ptr.vmem [resolvable:$true] %s360_s11 }
  0x53   : > { %s2278_s1 = smov 16   ;;  %s3045_s4 = sld [smem:[#allocation29_spill]] (!%p2460_p7) }
  0x54   : > { %372 = sbr.rel (%p2460_p7) target bundleno = 957 (0x3bd), region = 36  ;;  %s2512_s27 = sand.u32 (!%p2460_p7), 1, %s2249_s25  }
  0x55   : > { %s1570_s9 = sshll.u32 (!%p2460_p7), %s2512_s27, 4  ;;  %s375_s17 = scalar_lea.sflag (!%p2460_p7), [#allocation5], %s2512_s27 }
  0x56   : > { %s357_s24 = scalar_lea.hbm %s3044_s3, %s1733_s5  ;;  %s2516_s28 = scalar_lea.vmem (!%p2460_p7), [#allocation4], %s1570_s9 }
  0x57   : > { %s358_s19 = sshll.u32 %s357_s24, 4  ;;  %s359_s19 = int_to_ptr.hbm [resolvable:$true] %s358_s19 }
  0x58   : > { %1792 = dma.hbm_to_vmem [thread:$0]  (!%p2444_p2), %s359_s19, 4096, %s361_s11, %s349_s21, %s2277_s6, %s2277_s6, %s2278_s1  }
  0x59   : > { %p3046_p0 = scmp.ne.s32.totalorder %s3045_s4, 0 }
  0x5b   : > { %2212 = dma.done.wait (%p3046_p0), %s375_s17, 256  }
  0x5c   : > { %2214 = vsyncadd (%p3046_p0), %s375_s17, 4294967040  ;;  %s3047_s15 = sld [smem:[#allocation28_spill]] }
  0x5d   : > { %s3048_s20 = sld [smem:[#allocation21_spill]] }
  0x62   : > { %s384_s22 = sand.u32 1, %s3047_s15  }
  0x63   : > { %s386_s29 = sand.u32 1, %s3048_s20   ;;  %s385_s14 = scalar_lea.sflag [#allocation8], %s384_s22 }
  0x64   : > { %s2524_s8 = sshll.u32 %s386_s29, 1 }
  0x65   : > { %s388_s5 = scalar_lea.vmem [#allocation7], %s2524_s8 }
  0x66   : > { %2216 = dma.done.wait (%p2401_p11), %s385_s14, 64  }
  0x67   : > { %2218 = vsyncadd (%p2401_p11), %s385_s14, 4294967232  ;;  %s1573_s12 = sshll.u32 %s386_s29, 8  ;;  %s398_s18 = scalar_lea.vmem [#allocation9], %s2524_s8 }
  0x68   : > { %s405_s24 = scalar_lea.sflag [#allocation11], %s386_s29  ;;  %s2534_s19 = scalar_lea.vmem [#allocation10], %s1573_s12 }
  0x69   : > { %2220 = dma.done.wait (%p2401_p11), %s405_s24, 4096  }
  0x6a   : > { %2222 = vsyncadd (%p2401_p11), %s405_s24, 4294963200  ;;  %s3050_s10 = sld [smem:[#allocation24_spill]]  ;;  %s1574_s11 = sshll.u32 %s2512_s27, 2 }
  0x6b   : > { %s2542_s21 = scalar_lea.vmem [#allocation12], %s1574_s11  ;;  %s455_s6 = scalar_lea.vmem [#allocation13], %s2524_s8 }
  0x6c   : > { %s3001_s1 = scalar_lea.vmem [#allocation15], %s2524_s8  ;;  %s3051_s4 = sld [smem:[#allocation23_spill]] }
  0x70   : > { %p471_p2 = scmp.eq.s32.totalorder %s3050_s10, 0 }
  0x72   : > { %p1577_p7 = scmp.ne.s32.totalorder %s3051_s4, 0 }
  0x74   : > { %475 = sbr.rel (%p1577_p7) target bundleno = 124 (0x7c), region = 56 }
  0x79   : > { %v476_v0 = vld [vmem:[%s388_s5] sm:$0x3]  ;;  %v478_v1 = vld [vmem:[%s398_s18] sm:$0x3] }
  0x7a   : > { %477 = vst [vmem:[#allocation2] sm:$0x3] %v476_v0 }
  0x7b   : > { %479 = vst [vmem:[#allocation3] sm:$0x3] %v478_v1 }
  0x7c PF: > { %v1693_v2 = vld [vmem:[%s2534_s19 + $0xe0] sm:$0xf]  ;;  %v1764_v3 = vld [vmem:[%s2534_s19 + $0xec] sm:$0xf0]  ;;  %v1762_v4 = vld [vmem:[%s2534_s19 + $0xe4] sm:$0xf] }
  0x7d   : > { %v2550_v5 = vor.u32 %v1764_v3, %v1693_v2  ;;  %v1695_v6 = vld [vmem:[%s2534_s19 + $0xf0] sm:$0xf0]  ;;  %v1701_v7 = vld [vmem:[%s2534_s19 + $0xe8] sm:$0xf]  ;;  %v1765_v8 = vld [vmem:[%s2534_s19 + $0xf4] sm:$0xf0] }
  0x7e   : > { %v2555_v9 = vor.u32 %v1762_v4, %v1695_v6  ;;  %v2557_v10 = vor.u32 %v1765_v8, %v1701_v7  ;;  %v1763_v11 = vld [vmem:[%s2534_s19 + $0xec] sm:$0xf]  ;;  %v1703_v12 = vld [vmem:[%s2534_s19 + $0xf8] sm:$0xf0]  ;;  %v1677_v13 = vld [vmem:[%s2534_s19 + $0xc0] sm:$0xf] }
  0x7f   : > { %680 = vmatpush.bf16.msra.mxu0 %v2550_v5  ;;  %v2563_v14 = vor.u32 %v1763_v11, %v1703_v12  ;;  %v1760_v15 = vld [vmem:[%s2534_s19 + $0xcc] sm:$0xf0]  ;;  %v1758_v16 = vld [vmem:[%s2534_s19 + $0xc4] sm:$0xf]  ;;  %v1679_v17 = vld [vmem:[%s2534_s19 + $0xd0] sm:$0xf0] }
  0x80   : > { %693 = vmatpush.bf16.msra.mxu1 %v2555_v9  ;;  %706 = vmatpush.bf16.msra.mxu2 %v2557_v10  ;;  %v2570_v18 = vor.u32 %v1760_v15, %v1677_v13  ;;  %v2572_v19 = vor.u32 %v1758_v16, %v1679_v17  ;;  %v1685_v20 = vld [vmem:[%s2534_s19 + $0xc8] sm:$0xf]  ;;  %v1761_v21 = vld [vmem:[%s2534_s19 + $0xd4] sm:$0xf0]  ;;  %v1759_v22 = vld [vmem:[%s2534_s19 + $0xcc] sm:$0xf] }
  0x81   : > { %719 = vmatpush.bf16.msra.mxu3 %v2563_v14  ;;  %v2578_v23 = vor.u32 %v1761_v21, %v1685_v20  ;;  %v1687_v24 = vld [vmem:[%s2534_s19 + $0xd8] sm:$0xf0]  ;;  %v1661_v25 = vld [vmem:[%s2534_s19 + $0xa0] sm:$0xf]  ;;  %v1756_v26 = vld [vmem:[%s2534_s19 + $0xac] sm:$0xf0] }
  0x82   : > { %v2583_v27 = vor.u32 %v1759_v22, %v1687_v24  ;;  %v1754_v28 = vld [vmem:[%s2534_s19 + $0xa4] sm:$0xf]  ;;  %v1663_v29 = vld [vmem:[%s2534_s19 + $0xb0] sm:$0xf0]  ;;  %v1669_v30 = vld [vmem:[%s2534_s19 + $0xa8] sm:$0xf]  ;;  %v2589_v31 = vor.u32 %v1756_v26, %v1661_v25 }
  0x83   : > { %681 = vmatpush.bf16.msra.mxu0 %v2570_v18  ;;  %v1757_v32 = vld [vmem:[%s2534_s19 + $0xb4] sm:$0xf0]  ;;  %v1755_v33 = vld [vmem:[%s2534_s19 + $0xac] sm:$0xf]  ;;  %v1671_v34 = vld [vmem:[%s2534_s19 + $0xb8] sm:$0xf0]  ;;  %v2596_v35 = vor.u32 %v1754_v28, %v1663_v29 }
  0x84   : > { %694 = vmatpush.bf16.msra.mxu1 %v2572_v19  ;;  %707 = vmatpush.bf16.msra.mxu2 %v2578_v23  ;;  %v2598_v36 = vor.u32 %v1757_v32, %v1669_v30  ;;  %v1645_v37 = vld [vmem:[%s2534_s19 + $0x80] sm:$0xf]  ;;  %v1752_v38 = vld [vmem:[%s2534_s19 + $0x8c] sm:$0xf0]  ;;  %v1750_v39 = vld [vmem:[%s2534_s19 + $0x84] sm:$0xf]  ;;  %v2604_v40 = vor.u32 %v1755_v33, %v1671_v34 }
  0x85   : > { %720 = vmatpush.bf16.msra.mxu3 %v2583_v27  ;;  %v1647_v41 = vld [vmem:[%s2534_s19 + $0x90] sm:$0xf0]  ;;  %v1653_v42 = vld [vmem:[%s2534_s19 + $0x88] sm:$0xf]  ;;  %v1753_v43 = vld [vmem:[%s2534_s19 + $0x94] sm:$0xf0]  ;;  %v2612_v46 = vor.u32 %v1752_v38, %v1645_v37 }
  0x86   : > { %v1751_v44 = vld [vmem:[%s2534_s19 + $0x8c] sm:$0xf]  ;;  %v1655_v45 = vld [vmem:[%s2534_s19 + $0x98] sm:$0xf0]  ;;  %v2616_v47 = vor.u32 %v1750_v39, %v1647_v41  ;;  %v2618_v48 = vor.u32 %v1753_v43, %v1653_v42  ;;  %v1629_v49 = vld [vmem:[%s2534_s19 + $0x60] sm:$0xf] }
  0x87   : > { %682 = vmatpush.bf16.msra.mxu0 %v2589_v31  ;;  %v1748_v50 = vld [vmem:[%s2534_s19 + $0x6c] sm:$0xf0]  ;;  %v1746_v51 = vld [vmem:[%s2534_s19 + $0x64] sm:$0xf]  ;;  %v2624_v52 = vor.u32 %v1751_v44, %v1655_v45  ;;  %v1631_v53 = vld [vmem:[%s2534_s19 + $0x70] sm:$0xf0] }
  0x88   : > { %695 = vmatpush.bf16.msra.mxu1 %v2596_v35  ;;  %708 = vmatpush.bf16.msra.mxu2 %v2598_v36  ;;  %v1637_v54 = vld [vmem:[%s2534_s19 + $0x68] sm:$0xf]  ;;  %v1749_v55 = vld [vmem:[%s2534_s19 + $0x74] sm:$0xf0]  ;;  %v1747_v56 = vld [vmem:[%s2534_s19 + $0x6c] sm:$0xf]  ;;  %v2632_v58 = vor.u32 %v1748_v50, %v1629_v49  ;;  %v2636_v59 = vor.u32 %v1746_v51, %v1631_v53 }
  0x89   : > { %721 = vmatpush.bf16.msra.mxu3 %v2604_v40  ;;  %v1639_v57 = vld [vmem:[%s2534_s19 + $0x78] sm:$0xf0]  ;;  %v2638_v60 = vor.u32 %v1749_v55, %v1637_v54  ;;  %v1613_v61 = vld [vmem:[%s2534_s19 + $0x40] sm:$0xf]  ;;  %v1744_v62 = vld [vmem:[%s2534_s19 + $0x4c] sm:$0xf0] }
  0x8a   : > { %v1742_v63 = vld [vmem:[%s2534_s19 + $0x44] sm:$0xf]  ;;  %v2644_v0 = vor.u32 %v1747_v56, %v1639_v57  ;;  %v1615_v1 = vld [vmem:[%s2534_s19 + $0x50] sm:$0xf0]  ;;  %v1621_v2 = vld [vmem:[%s2534_s19 + $0x48] sm:$0xf]  ;;  %v2652_v7 = vor.u32 %v1744_v62, %v1613_v61 }
  0x8b   : > { %683 = vmatpush.bf16.msra.mxu0 %v2612_v46  ;;  %v1745_v3 = vld [vmem:[%s2534_s19 + $0x54] sm:$0xf0]  ;;  %v1743_v4 = vld [vmem:[%s2534_s19 + $0x4c] sm:$0xf]  ;;  %v1623_v6 = vld [vmem:[%s2534_s19 + $0x58] sm:$0xf0]  ;;  %v2656_v8 = vor.u32 %v1742_v63, %v1615_v1 }
  0x8c   : > { %696 = vmatpush.bf16.msra.mxu1 %v2616_v47  ;;  %709 = vmatpush.bf16.msra.mxu2 %v2618_v48  ;;  %v2658_v11 = vor.u32 %v1745_v3, %v1621_v2  ;;  %v1597_v12 = vld [vmem:[%s2534_s19 + $0x20] sm:$0xf]  ;;  %v1740_v13 = vld [vmem:[%s2534_s19 + $0x2c] sm:$0xf0]  ;;  %v1738_v15 = vld [vmem:[%s2534_s19 + $0x24] sm:$0xf]  ;;  %v2664_v16 = vor.u32 %v1743_v4, %v1623_v6 }
  0x8d   : > { %722 = vmatpush.bf16.msra.mxu3 %v2624_v52  ;;  %v1599_v17 = vld [vmem:[%s2534_s19 + $0x30] sm:$0xf0]  ;;  %v1605_v20 = vld [vmem:[%s2534_s19 + $0x28] sm:$0xf]  ;;  %v1741_v21 = vld [vmem:[%s2534_s19 + $0x34] sm:$0xf0]  ;;  %v2672_v25 = vor.u32 %v1740_v13, %v1597_v12 }
  0x8e   : > { %v1739_v22 = vld [vmem:[%s2534_s19 + $0x2c] sm:$0xf]  ;;  %v1607_v24 = vld [vmem:[%s2534_s19 + $0x38] sm:$0xf0]  ;;  %v2676_v26 = vor.u32 %v1738_v15, %v1599_v17  ;;  %v2678_v28 = vor.u32 %v1741_v21, %v1605_v20  ;;  %v1581_v29 = vld [vmem:[%s2534_s19] sm:$0xf] }
  0x8f   : > { %684 = vmatpush.bf16.msra.mxu0 %v2632_v58  ;;  %v1736_v30 = vld [vmem:[%s2534_s19 + $0xc] sm:$0xf0]  ;;  %v1734_v32 = vld [vmem:[%s2534_s19 + $0x4] sm:$0xf]  ;;  %v2684_v33 = vor.u32 %v1739_v22, %v1607_v24  ;;  %v1583_v34 = vld [vmem:[%s2534_s19 + $0x10] sm:$0xf0] }
  0x90   : > { %697 = vmatpush.bf16.msra.mxu1 %v2636_v59  ;;  %710 = vmatpush.bf16.msra.mxu2 %v2638_v60  ;;  %v1589_v37 = vld [vmem:[%s2534_s19 + $0x8] sm:$0xf]  ;;  %v1737_v38 = vld [vmem:[%s2534_s19 + $0x14] sm:$0xf0]  ;;  %v1735_v39 = vld [vmem:[%s2534_s19 + $0xc] sm:$0xf]  ;;  %v2692_v42 = vor.u32 %v1736_v30, %v1581_v29  ;;  %v2696_v44 = vor.u32 %v1734_v32, %v1583_v34 }
  0x91   : > { %723 = vmatpush.bf16.msra.mxu3 %v2644_v0  ;;  %v1591_v41 = vld [vmem:[%s2534_s19 + $0x18] sm:$0xf0]  ;;  %v512_v43 = vld [vmem:[#allocation2] sm:$0x3]  ;;  %v2698_v45 = vor.u32 %v1737_v38, %v1589_v37  ;;  %s2773_s17 = scalar_select %p471_p2, 0, 3 }
  0x92   : > { %v2701_v49 = vor.u32 %v1735_v39, %v1591_v41  ;;  %v519_v50 = vpack.c.bf16 %v512_v43, %v512_v43  ;;  %vm739_vm0 = vcmask 1041408   ;;  %vm741_vm1 = vcmask 1045508   ;;  %s2819_s29 = scalar_select %p471_p2, 1, 2 }
  0x93   : > { %685 = vmatpush.bf16.msra.mxu0 %v2652_v7  ;;  %s1578_s15 = sshll.u32 %s2773_s17, 2  ;;  %vm743_vm2 = vcmask 1043456   ;;  %s818_s13 = scalar_lea.vmem %s2542_s21, %s2773_s17 [#allocation12] }
  0x94   : > { %698 = vmatpush.bf16.msra.mxu1 %v2656_v8  ;;  %711 = vmatpush.bf16.msra.mxu2 %v2658_v11  ;;  %s516_s20 = scalar_lea.vmem %s2516_s28, %s1578_s15 [#allocation4]  ;;  %s1710_s14 = sshll.u32 %s2819_s29, 2 }
  0x95   : > { %724 = vmatpush.bf16.msra.mxu3 %v2664_v16  ;;  %v517_v55 = vld [vmem:[%s516_s20] sm:$0xf]  ;;  %s822_s5 = scalar_lea.vmem %s2516_s28, %s1710_s14 [#allocation4]  ;;  %s960_s12 = scalar_lea.vmem %s2542_s21, %s2819_s29 [#allocation12] }
  0x96   : > { %v518_v1 = vunpack.c.l.bf16 %v517_v55  ;;  %s2834_s18 = scalar_select %p471_p2, 2, 1 }
  0x97   : > { %686 = vmatpush.bf16.msra.mxu0 %v2672_v25  ;;  %s2849_s11 = scalar_select %p471_p2, 3, 0 }
  0x98   : > { %699 = vmatpush.bf16.msra.mxu1 %v2676_v26  ;;  %712 = vmatpush.bf16.msra.mxu2 %v2678_v28  ;;  %s1714_s24 = sshll.u32 %s2834_s18, 2  ;;  %s1102_s10 = scalar_lea.vmem %s2542_s21, %s2834_s18 [#allocation12] }
  0x99   : > { %725 = vmatpush.bf16.msra.mxu3 %v2684_v33  ;;  %s964_s19 = scalar_lea.vmem %s2516_s28, %s1714_s24 [#allocation4]  ;;  %s1718_s4 = sshll.u32 %s2849_s11, 2 }
  0x9a   : > { %s1106_s17 = scalar_lea.vmem %s2516_s28, %s1718_s4 [#allocation4]  ;;  %s1244_s28 = scalar_lea.vmem %s2542_s21, %s2849_s11 [#allocation12] }
  0x9b   : > { %687 = vmatpush.bf16.msra.mxu0 %v2692_v42  ;;  %s3053_s9 = sld [smem:[#allocation23_spill]] }
  0x9c   : > { %700 = vmatpush.bf16.msra.mxu1 %v2696_v44  ;;  %713 = vmatpush.bf16.msra.mxu2 %v2698_v45 }
  0x9d   : > { %726 = vmatpush.bf16.msra.mxu3 %v2701_v49 }
  0x9e   : > { %688 = vmatmul.bf16.vlgmr.msra.gmra.mxu0 %v519_v50 }
  0x9f   : > { %825 = vmatpush.bf16.msrb.mxu0 %v2550_v5  ;;  %701 = vmatmul.bf16.vlgmr.msra.gmra.mxu1 %v519_v50 }
  0xa0   : > { %838 = vmatpush.bf16.msrb.mxu1 %v2555_v9  ;;  %714 = vmatmul.bf16.vlgmr.msra.gmra.mxu2 %v519_v50 }
  0xa1   : > { %727 = vmatmul.bf16.vlgmr.msra.gmra.mxu3 %v519_v50  ;;  %851 = vmatpush.bf16.msrb.mxu2 %v2557_v10  ;;  %p1722_p11 = scmp.ne.s32.totalorder %s3053_s9, 1 }
  0xa2   : > { %864 = vmatpush.bf16.msrb.mxu3 %v2563_v14 }
  0xa3   : > { %826 = vmatpush.bf16.msrb.mxu0 %v2570_v18 }
  0xa4   : > { %839 = vmatpush.bf16.msrb.mxu1 %v2572_v19 }
  0xa5   : > { %852 = vmatpush.bf16.msrb.mxu2 %v2578_v23 }
  0xa6   : > { %865 = vmatpush.bf16.msrb.mxu3 %v2583_v27 }
  0xa7   : > { %827 = vmatpush.bf16.msrb.mxu0 %v2589_v31 }
  0xa8   : > { %840 = vmatpush.bf16.msrb.mxu1 %v2596_v35 }
  0xa9   : > { %853 = vmatpush.bf16.msrb.mxu2 %v2598_v36 }
  0xaa   : > { %866 = vmatpush.bf16.msrb.mxu3 %v2604_v40 }
  0xab   : > { %828 = vmatpush.bf16.msrb.mxu0 %v2612_v46 }
  0xac   : > { %841 = vmatpush.bf16.msrb.mxu1 %v2616_v47 }
  0xad   : > { %854 = vmatpush.bf16.msrb.mxu2 %v2618_v48 }
  0xae   : > { %867 = vmatpush.bf16.msrb.mxu3 %v2624_v52 }
  0xaf   : > { %829 = vmatpush.bf16.msrb.mxu0 %v2632_v58 }
  0xb0   : > { %842 = vmatpush.bf16.msrb.mxu1 %v2636_v59 }
  0xb1   : > { %855 = vmatpush.bf16.msrb.mxu2 %v2638_v60 }
  0xb2   : > { %868 = vmatpush.bf16.msrb.mxu3 %v2644_v0 }
  0xb3   : > { %830 = vmatpush.bf16.msrb.mxu0 %v2652_v7 }
  0xb4   : > { %843 = vmatpush.bf16.msrb.mxu1 %v2656_v8 }
  0xb5   : > { %856 = vmatpush.bf16.msrb.mxu2 %v2658_v11 }
  0xb6   : > { %869 = vmatpush.bf16.msrb.mxu3 %v2664_v16 }
  0xb7   : > { %831 = vmatpush.bf16.msrb.mxu0 %v2672_v25 }
  0xb8   : > { %844 = vmatpush.bf16.msrb.mxu1 %v2676_v26 }
  0xb9   : > { %857 = vmatpush.bf16.msrb.mxu2 %v2678_v28 }
  0xba   : > { %870 = vmatpush.bf16.msrb.mxu3 %v2684_v33 }
  0xbb   : > { %832 = vmatpush.bf16.msrb.mxu0 %v2692_v42 }
  0xbc   : > { %845 = vmatpush.bf16.msrb.mxu1 %v2696_v44 }
  0xbd   : > { %858 = vmatpush.bf16.msrb.mxu2 %v2698_v45 }
  0xbe   : > { %871 = vmatpush.bf16.msrb.mxu3 %v2701_v49 }
  0xbf   : > { %967 = vmatpush.bf16.msra.mxu0 %v2550_v5 }
  0xc0   : > { %980 = vmatpush.bf16.msra.mxu1 %v2555_v9 }
  0xc1   : > { %993 = vmatpush.bf16.msra.mxu2 %v2557_v10 }
  0xc2   : > { %1006 = vmatpush.bf16.msra.mxu3 %v2563_v14 }
  0xc3   : > { %968 = vmatpush.bf16.msra.mxu0 %v2570_v18 }
  0xc4   : > { %981 = vmatpush.bf16.msra.mxu1 %v2572_v19 }
  0xc5   : > { %994 = vmatpush.bf16.msra.mxu2 %v2578_v23 }
  0xc6   : > { %1007 = vmatpush.bf16.msra.mxu3 %v2583_v27 }
  0xc7   : > { %969 = vmatpush.bf16.msra.mxu0 %v2589_v31 }
  0xc8   : > { %982 = vmatpush.bf16.msra.mxu1 %v2596_v35 }
  0xc9   : > { %995 = vmatpush.bf16.msra.mxu2 %v2598_v36 }
  0xca   : > { %1008 = vmatpush.bf16.msra.mxu3 %v2604_v40 }
  0xcb   : > { %970 = vmatpush.bf16.msra.mxu0 %v2612_v46 }
  0xcc   : > { %983 = vmatpush.bf16.msra.mxu1 %v2616_v47 }
  0xcd   : > { %996 = vmatpush.bf16.msra.mxu2 %v2618_v48 }
  0xce   : > { %1009 = vmatpush.bf16.msra.mxu3 %v2624_v52 }
  0xcf   : > { %971 = vmatpush.bf16.msra.mxu0 %v2632_v58 }
  0xd0   : > { %984 = vmatpush.bf16.msra.mxu1 %v2636_v59 }
  0xd1   : > { %997 = vmatpush.bf16.msra.mxu2 %v2638_v60 }
  0xd2   : > { %1010 = vmatpush.bf16.msra.mxu3 %v2644_v0 }
  0xd3   : > { %972 = vmatpush.bf16.msra.mxu0 %v2652_v7 }
  0xd4   : > { %985 = vmatpush.bf16.msra.mxu1 %v2656_v8 }
  0xd5   : > { %998 = vmatpush.bf16.msra.mxu2 %v2658_v11 }
  0xd6   : > { %1011 = vmatpush.bf16.msra.mxu3 %v2664_v16 }
  0xd7   : > { %973 = vmatpush.bf16.msra.mxu0 %v2672_v25 }
  0xd8   : > { %986 = vmatpush.bf16.msra.mxu1 %v2676_v26 }
  0xd9   : > { %999 = vmatpush.bf16.msra.mxu2 %v2678_v28 }
  0xda   : > { %1012 = vmatpush.bf16.msra.mxu3 %v2684_v33 }
  0xdb   : > { %974 = vmatpush.bf16.msra.mxu0 %v2692_v42 }
  0xdc   : > { %987 = vmatpush.bf16.msra.mxu1 %v2696_v44 }
  0xdd   : > { %1000 = vmatpush.bf16.msra.mxu2 %v2698_v45 }
  0xde   : > { %1013 = vmatpush.bf16.msra.mxu3 %v2701_v49 }
 0x11b   : > { %v689_v51 = vpop.f32.mrf.mxu0 }
 0x11c   : > { %v702_v53 = vpop.f32.mrf.mxu1 }
 0x11d   : > { %v736_v54 = vrot.slane %v702_v53, 6 }
 0x11f   : > { %v740_v63 = vsel %vm739_vm0, %v689_v51, %v736_v54 }
 0x123   : > { %v715_v56 = vpop.f32.mrf.mxu2  ;;  %v691_v62 = vpop.f32.mrf.mxu0 }
 0x124   : > { %v737_v57 = vrot.slane %v715_v56, 4  ;;  %v728_v61 = vpop.f32.mrf.mxu3  ;;  %v704_v3 = vpop.f32.mrf.mxu1 }
 0x125   : > { %v738_v2 = vrot.slane %v728_v61, 2 }
 0x127   : > { %v742_v4 = vsel %vm741_vm1, %v737_v57, %v738_v2 }
 0x128   : > { %v744_v6 = vsel %vm743_vm2, %v740_v63, %v742_v4 }
 0x129   : > { %v746_v12 = vadd.f32 %v744_v6, %v518_v1 }
 0x12b   : > { %v1707_v13 = vmul.f32 -1.442695, %v746_v12  ;;  %v767_v15 = vrot.slane %v746_v12, 2  ;;  %v791_v17 = vrot.slane %v746_v12, 6  ;;  %v717_v20 = vpop.f32.mrf.mxu2  ;;  %v788_v50 = vrot.slane %v746_v12, 4 }
 0x12c   : > { %v730_v21 = vpop.f32.mrf.mxu3 }
 0x12d   : > { %1899 = vpow2.f32 %v1707_v13  ;;  %v1708_v22 = vmul.f32 -1.442695, %v767_v15  ;;  %v1709_v24 = vmul.f32 -1.442695, %v791_v17  ;;  %v513_v15 = vld [vmem:[#allocation3] sm:$0x3] }
 0x12f   : > { %1901 = vpow2.f32 %v1708_v22 }
 0x130   : > { %1903 = vpow2.f32 %v1709_v24 }
 0x133   : > { %v1900_v29 = vpop.eup %1899 }
 0x134   : > { %v750_v30 = vadd.f32 1.0, %v1900_v29 }
 0x135   : > { %v1902_v32 = vpop.eup %1901 }
 0x136   : > { %v1904_v34 = vpop.eup %1903  ;;  %1905 = vrcp.f32 %v750_v30  ;;  %v772_v37 = vadd.f32 1.0, %v1902_v32  ;;  %v762_v55 = vand.u32 2147483648, %v750_v30  ;;  %v760_v62 = vand.u32 2147483647, %v750_v30 }
 0x137   : > { %v796_v38 = vadd.f32 1.0, %v1904_v34  ;;  %vm756_vm4 = vweird.f32 %v750_v30 }
 0x138   : > { %1907 = vrcp.f32 %v772_v37  ;;  %v784_v63 = vand.u32 2147483648, %v772_v37  ;;  %v782_v3 = vand.u32 2147483647, %v772_v37  ;;  %v763_v4 = vor.u32 1.1754944e-38, %v762_v55 }
 0x139   : > { %1909 = vrcp.f32 %v796_v38  ;;  %vm761_vm7 = vcmp.eq.f32.partialorder %v760_v62, 8.507059e+37  ;;  %vm778_vm8 = vweird.f32 %v772_v37  ;;  %vm802_vm12 = vweird.f32 %v796_v38 }
 0x13a   : > { %1911 = vtanh.f32 %v788_v50  ;;  %v785_v20 = vor.u32 1.1754944e-38, %v784_v63  ;;  %vm783_vm10 = vcmp.eq.f32.partialorder %v782_v3, 8.507059e+37 }
 0x13c   : > { %v1906_v39 = vpop.eup %1905 }
 0x13d   : > { %v752_v41 = vmul.f32 %v1906_v39, %v750_v30  ;;  %vm757_vm3 = vweird.f32 %v1906_v39 }
 0x13e   : > { %v1908_v43 = vpop.eup %1907  ;;  %vm758_vm6 = vmor %vm756_vm4, %vm757_vm3 }
 0x13f   : > { %v1910_v51 = vpop.eup %1909  ;;  %v753_v53 = vsub.f32 1.0, %v752_v41  ;;  %v774_v54 = vmul.f32 %v1908_v43, %v772_v37  ;;  %vm779_vm5 = vweird.f32 %v1908_v43  ;;  %v806_v37 = vand.u32 2147483647, %v796_v38 }
 0x140   : > { %v798_v56 = vmul.f32 %v1910_v51, %v796_v38  ;;  %vm780_vm9 = vmor %vm778_vm8, %vm779_vm5  ;;  %v1912_v22 = vpop.eup %1911  ;;  %vm803_vm11 = vweird.f32 %v1910_v51 }
 0x141   : > { %v775_v57 = vsub.f32 1.0, %v774_v54  ;;  %v754_v61 = vmul.f32 %v1906_v39, %v753_v53  ;;  %vm804_vm13 = vmor %vm802_vm12, %vm803_vm11  ;;  %vm807_vm14 = vcmp.eq.f32.partialorder %v806_v37, 8.507059e+37 }
 0x142   : > { %v799_v6 = vsub.f32 1.0, %v798_v56 }
 0x143   : > { %v755_v1 = vadd.f32 %v1906_v39, %v754_v61  ;;  %v776_v2 = vmul.f32 %v1908_v43, %v775_v57 }
 0x144   : > { %v800_v29 = vmul.f32 %v1910_v51, %v799_v6 }
 0x145   : > { %v759_v12 = vsel %vm758_vm6, %v1906_v39, %v755_v1  ;;  %v777_v13 = vadd.f32 %v1908_v43, %v776_v2  ;;  %v808_v39 = vand.u32 2147483648, %v796_v38 }
 0x146   : > { %v764_v17 = vsel %vm761_vm7, %v763_v4, %v759_v12  ;;  %v801_v41 = vadd.f32 %v1910_v51, %v800_v29 }
 0x147   : > { %v781_v21 = vsel %vm780_vm9, %v1908_v43, %v777_v13  ;;  %v813_v32 = vmul.f32 %v1912_v22, %v764_v17  ;;  %v809_v43 = vor.u32 1.1754944e-38, %v808_v39 }
 0x148   : > { %v786_v24 = vsel %vm783_vm10, %v785_v20, %v781_v21  ;;  %v805_v50 = vsel %vm804_vm13, %v1910_v51, %v801_v41 }
 0x149   : > { %v812_v30 = vmul.f32 %v786_v24, %v513_v15  ;;  %v810_v54 = vsel %vm807_vm14, %v809_v43, %v805_v50 }
 0x14b   : > { %v2780_v34 = vadd.f32 %v813_v32, %v812_v30 }
 0x14d   : > { %1913 = vtanh.f32 %v2780_v34 }
 0x153   : > { %v1914_v53 = vpop.eup %1913 }
 0x154   : > { %v816_v55 = vmul.f32 %v1914_v53, %v810_v54 }
 0x156   : > { %v817_v56 = vpack.c.bf16 %v816_v55, %v816_v55 }
 0x158   : > { %833 = vmatmul.bf16.vlgmr.msrb.gmra.mxu0 %v817_v56  ;;  %819 = vst [vmem:[%s818_s13] sm:$0x1] %v817_v56  ;;  %846 = vmatmul.bf16.vlgmr.msrb.gmra.mxu1 %v817_v56 }
 0x159   : > { %859 = vmatmul.bf16.vlgmr.msrb.gmra.mxu2 %v817_v56  ;;  %872 = vmatmul.bf16.vlgmr.msrb.gmra.mxu3 %v817_v56 }
 0x15a   : > { %1109 = vmatpush.bf16.msrb.mxu0 %v2550_v5  ;;  %1122 = vmatpush.bf16.msrb.mxu1 %v2555_v9 }
 0x15b   : > { %1135 = vmatpush.bf16.msrb.mxu2 %v2557_v10  ;;  %1148 = vmatpush.bf16.msrb.mxu3 %v2563_v14  ;;  %v823_v10 = vld [vmem:[%s822_s5] sm:$0xf] }
 0x15e   : > { %1110 = vmatpush.bf16.msrb.mxu0 %v2570_v18  ;;  %1123 = vmatpush.bf16.msrb.mxu1 %v2572_v19 }
 0x15f   : > { %1136 = vmatpush.bf16.msrb.mxu2 %v2578_v23  ;;  %1149 = vmatpush.bf16.msrb.mxu3 %v2583_v27  ;;  %v824_v27 = vunpack.c.l.bf16 %v823_v10 }
 0x162   : > { %1111 = vmatpush.bf16.msrb.mxu0 %v2589_v31  ;;  %1124 = vmatpush.bf16.msrb.mxu1 %v2596_v35 }
 0x163   : > { %1137 = vmatpush.bf16.msrb.mxu2 %v2598_v36  ;;  %1150 = vmatpush.bf16.msrb.mxu3 %v2604_v40 }
 0x166   : > { %1112 = vmatpush.bf16.msrb.mxu0 %v2612_v46  ;;  %1125 = vmatpush.bf16.msrb.mxu1 %v2616_v47 }
 0x167   : > { %1138 = vmatpush.bf16.msrb.mxu2 %v2618_v48  ;;  %1151 = vmatpush.bf16.msrb.mxu3 %v2624_v52 }
 0x16a   : > { %1113 = vmatpush.bf16.msrb.mxu0 %v2632_v58  ;;  %1126 = vmatpush.bf16.msrb.mxu1 %v2636_v59 }
 0x16b   : > { %1139 = vmatpush.bf16.msrb.mxu2 %v2638_v60  ;;  %1152 = vmatpush.bf16.msrb.mxu3 %v2644_v0 }
 0x16e   : > { %1114 = vmatpush.bf16.msrb.mxu0 %v2652_v7  ;;  %1127 = vmatpush.bf16.msrb.mxu1 %v2656_v8 }
 0x16f   : > { %1140 = vmatpush.bf16.msrb.mxu2 %v2658_v11  ;;  %1153 = vmatpush.bf16.msrb.mxu3 %v2664_v16 }
 0x172   : > { %1115 = vmatpush.bf16.msrb.mxu0 %v2672_v25  ;;  %1128 = vmatpush.bf16.msrb.mxu1 %v2676_v26 }
 0x173   : > { %1141 = vmatpush.bf16.msrb.mxu2 %v2678_v28  ;;  %1154 = vmatpush.bf16.msrb.mxu3 %v2684_v33 }
 0x176   : > { %1116 = vmatpush.bf16.msrb.mxu0 %v2692_v42  ;;  %1129 = vmatpush.bf16.msrb.mxu1 %v2696_v44 }
 0x177   : > { %1142 = vmatpush.bf16.msrb.mxu2 %v2698_v45  ;;  %1155 = vmatpush.bf16.msrb.mxu3 %v2701_v49 }
 0x1d5   : > { %v834_v5 = vpop.f32.mrf.mxu0  ;;  %v847_v9 = vpop.f32.mrf.mxu1 }
 0x1d6   : > { %v881_v14 = vrot.slane %v847_v9, 6 }
 0x1d8   : > { %v884_v40 = vsel %vm739_vm0, %v834_v5, %v881_v14 }
 0x1dc   : > { %v860_v18 = vpop.f32.mrf.mxu2  ;;  %v873_v19 = vpop.f32.mrf.mxu3 }
 0x1dd   : > { %v882_v23 = vrot.slane %v860_v18, 4  ;;  %v883_v31 = vrot.slane %v873_v19, 2  ;;  %v836_v35 = vpop.f32.mrf.mxu0  ;;  %v849_v36 = vpop.f32.mrf.mxu1  ;;  %v965_v18 = vld [vmem:[%s964_s19] sm:$0xf] }
 0x1de   : > { %v966_v35 = vunpack.c.l.bf16 %v965_v18 }
 0x1df   : > { %v885_v46 = vsel %vm741_vm1, %v882_v23, %v883_v31 }
 0x1e0   : > { %v886_v47 = vsel %vm743_vm2, %v884_v40, %v885_v46 }
 0x1e1   : > { %v888_v48 = vadd.f32 %v886_v47, %v824_v27 }
 0x1e3   : > { %v1711_v52 = vmul.f32 -1.442695, %v888_v48  ;;  %v909_v58 = vrot.slane %v888_v48, 2  ;;  %v933_v59 = vrot.slane %v888_v48, 6  ;;  %v930_v49 = vrot.slane %v888_v48, 4 }
 0x1e4   : > { %v862_v60 = vpop.f32.mrf.mxu2  ;;  %v875_v0 = vpop.f32.mrf.mxu3 }
 0x1e5   : > { %1915 = vpow2.f32 %v1711_v52  ;;  %v1712_v7 = vmul.f32 -1.442695, %v909_v58  ;;  %v1713_v8 = vmul.f32 -1.442695, %v933_v59 }
 0x1e7   : > { %1917 = vpow2.f32 %v1712_v7 }
 0x1e8   : > { %1919 = vpow2.f32 %v1713_v8 }
 0x1eb   : > { %v1916_v11 = vpop.eup %1915 }
 0x1ec   : > { %v892_v16 = vadd.f32 1.0, %v1916_v11 }
 0x1ed   : > { %v1918_v25 = vpop.eup %1917 }
 0x1ee   : > { %v1920_v26 = vpop.eup %1919  ;;  %1921 = vrcp.f32 %v892_v16  ;;  %v914_v28 = vadd.f32 1.0, %v1918_v25  ;;  %v904_v61 = vand.u32 2147483648, %v892_v16  ;;  %v902_v2 = vand.u32 2147483647, %v892_v16 }
 0x1ef   : > { %v938_v33 = vadd.f32 1.0, %v1920_v26  ;;  %vm898_vm3 = vweird.f32 %v892_v16 }
 0x1f0   : > { %1923 = vrcp.f32 %v914_v28  ;;  %v926_v3 = vand.u32 2147483648, %v914_v28  ;;  %v924_v12 = vand.u32 2147483647, %v914_v28  ;;  %v905_v13 = vor.u32 1.1754944e-38, %v904_v61 }
 0x1f1   : > { %1925 = vrcp.f32 %v938_v33  ;;  %vm903_vm6 = vcmp.eq.f32.partialorder %v902_v2, 8.507059e+37  ;;  %vm920_vm7 = vweird.f32 %v914_v28  ;;  %v950_v43 = vand.u32 2147483648, %v938_v33 }
 0x1f2   : > { %1927 = vtanh.f32 %v930_v49  ;;  %v927_v22 = vor.u32 1.1754944e-38, %v926_v3  ;;  %vm925_vm9 = vcmp.eq.f32.partialorder %v924_v12, 8.507059e+37  ;;  %vm944_vm11 = vweird.f32 %v938_v33 }
 0x1f3   : > { %v948_v53 = vand.u32 2147483647, %v938_v33  ;;  %v951_v55 = vor.u32 1.1754944e-38, %v950_v43 }
 0x1f4   : > { %v1922_v42 = vpop.eup %1921 }
 0x1f5   : > { %v894_v44 = vmul.f32 %v1922_v42, %v892_v16  ;;  %vm899_vm15 = vweird.f32 %v1922_v42  ;;  %vm949_vm13 = vcmp.eq.f32.partialorder %v948_v53, 8.507059e+37 }
 0x1f6   : > { %v1924_v45 = vpop.eup %1923  ;;  %vm900_vm5 = vmor %vm898_vm3, %vm899_vm15 }
 0x1f7   : > { %v1926_v38 = vpop.eup %1925  ;;  %v895_v51 = vsub.f32 1.0, %v894_v44  ;;  %v916_v57 = vmul.f32 %v1924_v45, %v914_v28  ;;  %vm921_vm4 = vweird.f32 %v1924_v45 }
 0x1f8   : > { %v940_v62 = vmul.f32 %v1926_v38, %v938_v33  ;;  %vm922_vm8 = vmor %vm920_vm7, %vm921_vm4  ;;  %v1928_v29 = vpop.eup %1927  ;;  %vm945_vm10 = vweird.f32 %v1926_v38 }
 0x1f9   : > { %v917_v63 = vsub.f32 1.0, %v916_v57  ;;  %v896_v1 = vmul.f32 %v1922_v42, %v895_v51  ;;  %vm946_vm12 = vmor %vm944_vm11, %vm945_vm10 }
 0x1fa   : > { %v941_v15 = vsub.f32 1.0, %v940_v62 }
 0x1fb   : > { %v897_v4 = vadd.f32 %v1922_v42, %v896_v1  ;;  %v918_v6 = vmul.f32 %v1924_v45, %v917_v63 }
 0x1fc   : > { %v942_v32 = vmul.f32 %v1926_v38, %v941_v15 }
 0x1fd   : > { %v901_v17 = vsel %vm900_vm5, %v1922_v42, %v897_v4  ;;  %v919_v20 = vadd.f32 %v1924_v45, %v918_v6 }
 0x1fe   : > { %v906_v21 = vsel %vm903_vm6, %v905_v13, %v901_v17  ;;  %v943_v50 = vadd.f32 %v1926_v38, %v942_v32 }
 0x1ff   : > { %v923_v24 = vsel %vm922_vm8, %v1924_v45, %v919_v20  ;;  %v955_v39 = vmul.f32 %v1928_v29, %v906_v21 }
 0x200   : > { %v928_v30 = vsel %vm925_vm9, %v927_v22, %v923_v24  ;;  %v947_v54 = vsel %vm946_vm12, %v1926_v38, %v943_v50 }
 0x201   : > { %v954_v41 = vmul.f32 %v928_v30, %v2780_v34  ;;  %v952_v34 = vsel %vm949_vm13, %v951_v55, %v947_v54 }
 0x203   : > { %v2827_v37 = vadd.f32 %v955_v39, %v954_v41 }
 0x205   : > { %1929 = vtanh.f32 %v2827_v37 }
 0x20b   : > { %v1930_v56 = vpop.eup %1929 }
 0x20c   : > { %v958_v5 = vmul.f32 %v1930_v56, %v952_v34 }
 0x20e   : > { %v959_v9 = vpack.c.bf16 %v958_v5, %v958_v5 }
 0x210   : > { %961 = vst [vmem:[%s960_s12] sm:$0x1] %v959_v9  ;;  %975 = vmatmul.bf16.vlgmr.msra.gmra.mxu0 %v959_v9  ;;  %988 = vmatmul.bf16.vlgmr.msra.gmra.mxu1 %v959_v9 }
 0x211   : > { %1001 = vmatmul.bf16.vlgmr.msra.gmra.mxu2 %v959_v9  ;;  %1014 = vmatmul.bf16.vlgmr.msra.gmra.mxu3 %v959_v9 }
 0x28d   : > { %v976_v10 = vpop.f32.mrf.mxu0  ;;  %v989_v14 = vpop.f32.mrf.mxu1 }
 0x28e   : > { %v1023_v19 = vrot.slane %v989_v14, 6 }
 0x290   : > { %v1026_v47 = vsel %vm739_vm0, %v976_v10, %v1023_v19 }
 0x294   : > { %v1002_v23 = vpop.f32.mrf.mxu2  ;;  %v1015_v27 = vpop.f32.mrf.mxu3 }
 0x295   : > { %v1024_v31 = vrot.slane %v1002_v23, 4  ;;  %v1025_v36 = vrot.slane %v1015_v27, 2  ;;  %v978_v40 = vpop.f32.mrf.mxu0  ;;  %v991_v46 = vpop.f32.mrf.mxu1  ;;  %v1107_v23 = vld [vmem:[%s1106_s17] sm:$0xf] }
 0x296   : > { %v1108_v40 = vunpack.c.l.bf16 %v1107_v23 }
 0x297   : > { %v1027_v48 = vsel %vm741_vm1, %v1024_v31, %v1025_v36 }
 0x298   : > { %v1028_v52 = vsel %vm743_vm2, %v1026_v47, %v1027_v48 }
 0x299   : > { %v1030_v58 = vadd.f32 %v1028_v52, %v966_v35 }
 0x29b   : > { %v1715_v59 = vmul.f32 -1.442695, %v1030_v58  ;;  %v1051_v60 = vrot.slane %v1030_v58, 2  ;;  %v1075_v0 = vrot.slane %v1030_v58, 6  ;;  %v1072_v51 = vrot.slane %v1030_v58, 4 }
 0x29c   : > { %v1004_v7 = vpop.f32.mrf.mxu2  ;;  %v1017_v8 = vpop.f32.mrf.mxu3 }
 0x29d   : > { %1931 = vpow2.f32 %v1715_v59  ;;  %v1716_v11 = vmul.f32 -1.442695, %v1051_v60  ;;  %v1717_v16 = vmul.f32 -1.442695, %v1075_v0 }
 0x29f   : > { %1933 = vpow2.f32 %v1716_v11 }
 0x2a0   : > { %1935 = vpow2.f32 %v1717_v16 }
 0x2a3   : > { %v1932_v25 = vpop.eup %1931 }
 0x2a4   : > { %v1034_v26 = vadd.f32 1.0, %v1932_v25 }
 0x2a5   : > { %v1934_v28 = vpop.eup %1933 }
 0x2a6   : > { %v1936_v33 = vpop.eup %1935  ;;  %1937 = vrcp.f32 %v1034_v26  ;;  %v1056_v42 = vadd.f32 1.0, %v1934_v28  ;;  %v1046_v63 = vand.u32 2147483648, %v1034_v26  ;;  %v1044_v4 = vand.u32 2147483647, %v1034_v26 }
 0x2a7   : > { %v1080_v44 = vadd.f32 1.0, %v1936_v33  ;;  %vm1040_vm15 = vweird.f32 %v1034_v26 }
 0x2a8   : > { %1939 = vrcp.f32 %v1056_v42  ;;  %v1068_v6 = vand.u32 2147483648, %v1056_v42  ;;  %v1066_v15 = vand.u32 2147483647, %v1056_v42  ;;  %v1047_v17 = vor.u32 1.1754944e-38, %v1046_v63 }
 0x2a9   : > { %1941 = vrcp.f32 %v1080_v44  ;;  %vm1045_vm5 = vcmp.eq.f32.partialorder %v1044_v4, 8.507059e+37  ;;  %vm1062_vm6 = vweird.f32 %v1056_v42  ;;  %v1092_v55 = vand.u32 2147483648, %v1080_v44 }
 0x2aa   : > { %1943 = vtanh.f32 %v1072_v51  ;;  %v1069_v29 = vor.u32 1.1754944e-38, %v1068_v6  ;;  %vm1067_vm8 = vcmp.eq.f32.partialorder %v1066_v15, 8.507059e+37  ;;  %vm1086_vm10 = vweird.f32 %v1080_v44 }
 0x2ab   : > { %v1090_v56 = vand.u32 2147483647, %v1080_v44  ;;  %v1093_v5 = vor.u32 1.1754944e-38, %v1092_v55 }
 0x2ac   : > { %v1938_v45 = vpop.eup %1937 }
 0x2ad   : > { %v1036_v49 = vmul.f32 %v1938_v45, %v1034_v26  ;;  %vm1041_vm14 = vweird.f32 %v1938_v45  ;;  %vm1091_vm12 = vcmp.eq.f32.partialorder %v1090_v56, 8.507059e+37 }
 0x2ae   : > { %v1940_v38 = vpop.eup %1939  ;;  %vm1042_vm4 = vmor %vm1040_vm15, %vm1041_vm14 }
 0x2af   : > { %v1942_v57 = vpop.eup %1941  ;;  %v1037_v61 = vsub.f32 1.0, %v1036_v49  ;;  %v1058_v62 = vmul.f32 %v1940_v38, %v1056_v42  ;;  %vm1063_vm3 = vweird.f32 %v1940_v38 }
 0x2b0   : > { %v1082_v1 = vmul.f32 %v1942_v57, %v1080_v44  ;;  %vm1064_vm7 = vmor %vm1062_vm6, %vm1063_vm3  ;;  %v1944_v32 = vpop.eup %1943  ;;  %vm1087_vm9 = vweird.f32 %v1942_v57 }
 0x2b1   : > { %v1059_v2 = vsub.f32 1.0, %v1058_v62  ;;  %v1038_v3 = vmul.f32 %v1938_v45, %v1037_v61  ;;  %vm1088_vm11 = vmor %vm1086_vm10, %vm1087_vm9 }
 0x2b2   : > { %v1083_v20 = vsub.f32 1.0, %v1082_v1 }
 0x2b3   : > { %v1039_v12 = vadd.f32 %v1938_v45, %v1038_v3  ;;  %v1060_v13 = vmul.f32 %v1940_v38, %v1059_v2 }
 0x2b4   : > { %v1084_v39 = vmul.f32 %v1942_v57, %v1083_v20 }
 0x2b5   : > { %v1043_v21 = vsel %vm1042_vm4, %v1938_v45, %v1039_v12  ;;  %v1061_v22 = vadd.f32 %v1940_v38, %v1060_v13 }
 0x2b6   : > { %v1048_v24 = vsel %vm1045_vm5, %v1047_v17, %v1043_v21  ;;  %v1085_v54 = vadd.f32 %v1942_v57, %v1084_v39 }
 0x2b7   : > { %v1065_v30 = vsel %vm1064_vm7, %v1940_v38, %v1061_v22  ;;  %v1097_v43 = vmul.f32 %v1944_v32, %v1048_v24 }
 0x2b8   : > { %v1070_v41 = vsel %vm1067_vm8, %v1069_v29, %v1065_v30  ;;  %v1089_v34 = vsel %vm1088_vm11, %v1942_v57, %v1085_v54 }
 0x2b9   : > { %v1096_v50 = vmul.f32 %v1070_v41, %v2827_v37  ;;  %v1094_v37 = vsel %vm1091_vm12, %v1093_v5, %v1089_v34 }
 0x2bb   : > { %v2842_v53 = vadd.f32 %v1097_v43, %v1096_v50 }
 0x2bd   : > { %1945 = vtanh.f32 %v2842_v53 }
 0x2c3   : > { %v1946_v9 = vpop.eup %1945 }
 0x2c4   : > { %v1100_v10 = vmul.f32 %v1946_v9, %v1094_v37 }
 0x2c6   : > { %v1101_v14 = vpack.c.bf16 %v1100_v10, %v1100_v10 }
 0x2c8   : > { %1103 = vst [vmem:[%s1102_s10] sm:$0x1] %v1101_v14  ;;  %1117 = vmatmul.bf16.vlgmr.msrb.gmra.mxu0 %v1101_v14  ;;  %1130 = vmatmul.bf16.vlgmr.msrb.gmra.mxu1 %v1101_v14 }
 0x2c9   : > { %1143 = vmatmul.bf16.vlgmr.msrb.gmra.mxu2 %v1101_v14  ;;  %1156 = vmatmul.bf16.vlgmr.msrb.gmra.mxu3 %v1101_v14 }
 0x345   : > { %v1118_v18 = vpop.f32.mrf.mxu0  ;;  %v1131_v19 = vpop.f32.mrf.mxu1 }
 0x346   : > { %v1165_v27 = vrot.slane %v1131_v19, 6 }
 0x348   : > { %v1168_v52 = vsel %vm739_vm0, %v1118_v18, %v1165_v27 }
 0x34c   : > { %v1144_v31 = vpop.f32.mrf.mxu2  ;;  %v1157_v35 = vpop.f32.mrf.mxu3 }
 0x34d   : > { %v1166_v36 = vrot.slane %v1144_v31, 4  ;;  %v1167_v46 = vrot.slane %v1157_v35, 2  ;;  %v1120_v47 = vpop.f32.mrf.mxu0  ;;  %v1133_v48 = vpop.f32.mrf.mxu1 }
 0x34f   : > { %v1169_v58 = vsel %vm741_vm1, %v1166_v36, %v1167_v46 }
 0x350   : > { %v1170_v59 = vsel %vm743_vm2, %v1168_v52, %v1169_v58 }
 0x351   : > { %v1172_v60 = vadd.f32 %v1170_v59, %v1108_v40 }
 0x353   : > { %v1719_v0 = vmul.f32 -1.442695, %v1172_v60  ;;  %v1193_v7 = vrot.slane %v1172_v60, 2  ;;  %v1217_v8 = vrot.slane %v1172_v60, 6  ;;  %v1214_v62 = vrot.slane %v1172_v60, 4 }
 0x354   : > { %v1146_v11 = vpop.f32.mrf.mxu2  ;;  %v1159_v16 = vpop.f32.mrf.mxu3 }
 0x355   : > { %1947 = vpow2.f32 %v1719_v0  ;;  %v1720_v25 = vmul.f32 -1.442695, %v1193_v7  ;;  %v1721_v26 = vmul.f32 -1.442695, %v1217_v8 }
 0x357   : > { %1949 = vpow2.f32 %v1720_v25 }
 0x358   : > { %1951 = vpow2.f32 %v1721_v26 }
 0x35b   : > { %v1948_v28 = vpop.eup %1947 }
 0x35c   : > { %v1176_v33 = vadd.f32 1.0, %v1948_v28 }
 0x35d   : > { %v1950_v42 = vpop.eup %1949 }
 0x35e   : > { %v1952_v44 = vpop.eup %1951  ;;  %1953 = vrcp.f32 %v1176_v33  ;;  %v1198_v45 = vadd.f32 1.0, %v1950_v42  ;;  %v1188_v3 = vand.u32 2147483648, %v1176_v33  ;;  %v1186_v6 = vand.u32 2147483647, %v1176_v33 }
 0x35f   : > { %v1222_v49 = vadd.f32 1.0, %v1952_v44  ;;  %vm1182_vm1 = vweird.f32 %v1176_v33 }
 0x360   : > { %1955 = vrcp.f32 %v1198_v45  ;;  %v1210_v15 = vand.u32 2147483648, %v1198_v45  ;;  %v1208_v20 = vand.u32 2147483647, %v1198_v45  ;;  %v1189_v22 = vor.u32 1.1754944e-38, %v1188_v3 }
 0x361   : > { %1957 = vrcp.f32 %v1222_v49  ;;  %vm1187_vm14 = vcmp.eq.f32.partialorder %v1186_v6, 8.507059e+37  ;;  %vm1204_vm15 = vweird.f32 %v1198_v45  ;;  %v1234_v5 = vand.u32 2147483648, %v1222_v49 }
 0x362   : > { %1959 = vtanh.f32 %v1214_v62  ;;  %v1211_v32 = vor.u32 1.1754944e-38, %v1210_v15  ;;  %vm1209_vm4 = vcmp.eq.f32.partialorder %v1208_v20, 8.507059e+37  ;;  %vm1228_vm6 = vweird.f32 %v1222_v49 }
 0x363   : > { %v1232_v9 = vand.u32 2147483647, %v1222_v49  ;;  %v1235_v10 = vor.u32 1.1754944e-38, %v1234_v5 }
 0x364   : > { %v1954_v38 = vpop.eup %1953 }
 0x365   : > { %v1178_v51 = vmul.f32 %v1954_v38, %v1176_v33  ;;  %vm1183_vm0 = vweird.f32 %v1954_v38  ;;  %vm1233_vm8 = vcmp.eq.f32.partialorder %v1232_v9, 8.507059e+37 }
 0x366   : > { %v1956_v57 = vpop.eup %1955  ;;  %vm1184_vm2 = vmor %vm1182_vm1, %vm1183_vm0 }
 0x367   : > { %v1179_v61 = vsub.f32 1.0, %v1178_v51  ;;  %v1958_v63 = vpop.eup %1957  ;;  %v1200_v1 = vmul.f32 %v1956_v57, %v1198_v45  ;;  %vm1205_vm13 = vweird.f32 %v1956_v57 }
 0x368   : > { %v1224_v4 = vmul.f32 %v1958_v63, %v1222_v49  ;;  %vm1206_vm3 = vmor %vm1204_vm15, %vm1205_vm13  ;;  %v1960_v39 = vpop.eup %1959  ;;  %vm1229_vm5 = vweird.f32 %v1958_v63 }
 0x369   : > { %v1180_v2 = vmul.f32 %v1954_v38, %v1179_v61  ;;  %v1201_v12 = vsub.f32 1.0, %v1200_v1  ;;  %vm1230_vm7 = vmor %vm1228_vm6, %vm1229_vm5 }
 0x36a   : > { %v1225_v24 = vsub.f32 1.0, %v1224_v4 }
 0x36b   : > { %v1181_v13 = vadd.f32 %v1954_v38, %v1180_v2  ;;  %v1202_v17 = vmul.f32 %v1956_v57, %v1201_v12 }
 0x36c   : > { %v1226_v43 = vmul.f32 %v1958_v63, %v1225_v24 }
 0x36d   : > { %v1185_v21 = vsel %vm1184_vm2, %v1954_v38, %v1181_v13  ;;  %v1203_v29 = vadd.f32 %v1956_v57, %v1202_v17 }
 0x36e   : > { %v1190_v30 = vsel %vm1187_vm14, %v1189_v22, %v1185_v21  ;;  %v1227_v34 = vadd.f32 %v1958_v63, %v1226_v43 }
 0x36f   : > { %v1207_v41 = vsel %vm1206_vm3, %v1956_v57, %v1203_v29  ;;  %v1239_v55 = vmul.f32 %v1960_v39, %v1190_v30 }
 0x370   : > { %v1212_v50 = vsel %vm1209_vm4, %v1211_v32, %v1207_v41  ;;  %v1231_v37 = vsel %vm1230_vm7, %v1958_v63, %v1227_v34 }
 0x371   : > { %v1238_v54 = vmul.f32 %v1212_v50, %v2842_v53  ;;  %v1236_v18 = vsel %vm1233_vm8, %v1235_v10, %v1231_v37 }
 0x373   : > { %v1240_v56 = vadd.f32 %v1239_v55, %v1238_v54 }
 0x375   : > { %1961 = vtanh.f32 %v1240_v56  ;;  %1247 = vst [vmem:[#allocation3] sm:$0x3] %v1240_v56 }
 0x37b   : > { %v1962_v14 = vpop.eup %1961 }
 0x37c   : > { %v1242_v19 = vmul.f32 %v1962_v14, %v1236_v18  ;;  %1251 = sbr.rel (%p1722_p11) target bundleno = 899 (0x383), region = 60 }
 0x37e   : > { %v1243_v53 = vpack.c.bf16 %v1242_v19, %v1242_v19  ;;  %1246 = vst [vmem:[#allocation2] sm:$0x3] %v1242_v19 }
 0x380   : > { %1245 = vst [vmem:[%s1244_s28] sm:$0x1] %v1243_v53 }
 0x381   : > { %1252 = vst [vmem:[%s455_s6] sm:$0x3] %v1242_v19 }
 0x382   : > { %1253 = vst [vmem:[%s3001_s1] sm:$0x3] %v1240_v56 }
 0x383 PF: > { %s3054_s15 = sld [smem:[#allocation24_spill]]  ;;  %s1300_s24 = sshll.u32 %s455_s6, 4  ;;  %s1301_s24 = int_to_ptr.vmem [resolvable:$true] %s1300_s24 }
 0x384   : > { %s3057_s12 = sld [smem:[#allocation42_spill]]  ;;  %s2872_s10 = scalar_lea.sflag [#allocation14], %s384_s22 }
 0x389   : > { %s1728_s29 = sshll.u32 %s3054_s15, 1 }
 0x38a   : > { %s1298_s18 = scalar_lea.hbm %s3057_s12, %s1728_s29  ;;  %s2103_s9 = scalar_lea.hbm %s3057_s12, 4 }
 0x38b   : > { %s1302_s19 = sshll.u32 %s1298_s18, 4  ;;  %s1303_s19 = int_to_ptr.hbm [resolvable:$true] %s1302_s19 }
 0x38c   : > { %s2097_s11 = sshra.s32 %s1303_s19, 4  ;;  %s2098_s11 = int_to_ptr.hbm [resolvable:$true] %s2097_s11 }
 0x38d   : > { %s2099_s4 = scalar_lea.hbm %s2098_s11, 2  ;;  %p2104_p3 = scmp.lt.s32.totalorder %s2098_s11, %s3057_s12 }
 0x38e   : > { %p2100_p8 = scmp.ne.s32.totalorder %s2098_s11, %s2099_s4  ;;  %p2105_p4 = scmp.lt.s32.totalorder %s2103_s9, %s2099_s4 }
 0x390   : > { %p2101_p9 = pnand %p2100_p8, %p2416_p1  ;;  %p2106_p6 = por %p2105_p4, %p2104_p3 }
 0x392   : > { %p2102_p10 = pneg %p2101_p9 }
 0x394   : > { %p2107_p0 = pnand %p2106_p6, %p2102_p10 }
 0x396   : > { %2110 = shalt.err (!%p2107_p0)
}
 0x397   : > { %s3058_s22 = sld [smem:[#allocation23_spill]]  ;;  %s1727_s20 = sshll.u32 %s3054_s15, 3 }
 0x398   : > { %1775 = dma.vmem_to_hbm [thread:$0]  (%p2416_p1), %s1301_s24, 32, %s1303_s19, %s2872_s10  }
 0x399   : > { %s1282_s11 = sshll.u32 %s2542_s21, 4  ;;  %s3060_s14 = sld [smem:[#allocation41_spill]]  ;;  %s1283_s11 = int_to_ptr.vmem [resolvable:$true] %s1282_s11 }
 0x39a   : > { %s3061_s3 = sld [smem:[#allocation43_spill]]  ;;  %s3062_s30 = scalar_lea.vmem [#allocation15], %s2524_s8 }
 0x39b   : > { %s2899_s24 = sshll.u32 %s3062_s30, 4  ;;  %s1255_s15 = scalar_lea.sflag [#allocation6], %s2512_s27  ;;  %s1316_s24 = int_to_ptr.vmem [resolvable:$true] %s2899_s24 }
 0x39d   : > { %s1273_s6 = ssub.s32 1, %s3058_s22 }
 0x39e   : > { %s3086_s22 = smov (!%p471_p2, %s3058_s22), %s1273_s6 }
 0x39f   : > { %s1726_s4 = sshll.u32 %s3086_s22, 2  ;;  %s2131_s0 = scalar_lea.hbm %s3060_s14, 16 }
 0x3a0   : > { %s1280_s17 = sadd.s32 %s1727_s20, %s1726_s4  ;;  %s1313_s12 = scalar_lea.hbm %s3061_s3, %s1728_s29 }
 0x3a1   : > { %s1281_s5 = scalar_lea.hbm %s3060_s14, %s1280_s17 }
 0x3a2   : > { %s1284_s16 = sshll.u32 %s1281_s5, 4  ;;  %s1285_s16 = int_to_ptr.hbm [resolvable:$true] %s1284_s16 }
 0x3a3   : > { %s2125_s21 = sshra.s32 %s1285_s16, 4  ;;  %s2126_s21 = int_to_ptr.hbm [resolvable:$true] %s2125_s21 }
 0x3a4   : > { %s2127_s19 = scalar_lea.hbm %s2126_s21, 4  ;;  %p2132_p8 = scmp.lt.s32.totalorder %s2126_s21, %s3060_s14 }
 0x3a5   : > { %p2128_p2 = scmp.ne.s32.totalorder %s2126_s21, %s2127_s19  ;;  %p2133_p9 = scmp.lt.s32.totalorder %s2131_s0, %s2127_s19 }
 0x3a7   : > { %p2129_p7 = pnand %p2128_p2, %p2408_p12  ;;  %p2134_p10 = por %p2133_p9, %p2132_p8 }
 0x3a9   : > { %p2130_p11 = pneg %p2129_p7 }
 0x3ab   : > { %p2135_p3 = pnand %p2134_p10, %p2130_p11 }
 0x3ad   : > { %2138 = shalt.err (!%p2135_p3)
}
 0x3ae   : > { %s2279_s30 = smov 16   ;;  %s2280_s27 = smov 1  }
 0x3af   : > { %1774 = dma.vmem_to_hbm [thread:$0]  (%p2408_p12), %s1283_s11, 64, %s1285_s16, %s1255_s15, %s2279_s30, %s2279_s30, %s2280_s27  }
 0x3b0   : > { %s1317_s8 = sshll.u32 %s1313_s12, 4  ;;  %s2159_s9 = scalar_lea.hbm %s3061_s3, 4  ;;  %s1318_s8 = int_to_ptr.hbm [resolvable:$true] %s1317_s8 }
 0x3b1   : > { %s2153_s20 = sshra.s32 %s1318_s8, 4  ;;  %s2154_s20 = int_to_ptr.hbm [resolvable:$true] %s2153_s20 }
 0x3b2   : > { %s2155_s4 = scalar_lea.hbm %s2154_s20, 2  ;;  %p2160_p2 = scmp.lt.s32.totalorder %s2154_s20, %s3061_s3 }
 0x3b3   : > { %p2156_p4 = scmp.ne.s32.totalorder %s2154_s20, %s2155_s4  ;;  %p2161_p7 = scmp.lt.s32.totalorder %s2159_s9, %s2155_s4 }
 0x3b5   : > { %p2157_p6 = pnand %p2156_p4, %p2416_p1  ;;  %p2162_p11 = por %p2161_p7, %p2160_p2 }
 0x3b7   : > { %p2158_p0 = pneg %p2157_p6 }
 0x3b9   : > { %p2163_p12 = pnand %p2162_p11, %p2158_p0 }
 0x3bb   : > { %2166 = shalt.err (!%p2163_p12)
}
 0x3bc   : > { %1776 = dma.vmem_to_hbm [thread:$0]  (%p2416_p1), %s1316_s24, 32, %s1318_s8, %s2872_s10  }
 0x3bd PF: > { %s3063_s16 = sld [smem:[#allocation27_spill]] }
 0x3be   : > { %s3064_s12 = sld [smem:[#allocation22_spill]] }
 0x3c3   : > { %p1804_p8 = scmp.ge.s32.totalorder %s3063_s16, 2 }
 0x3c4   : > { %s1329_s11 = sand.u32 1, %s3064_s12  }
 0x3c5   : > { %p1794_p9 = pnand %p1804_p8, %p2412_p13  ;;  %s1330_s15 = scalar_lea.sflag [#allocation6], %s1329_s11 }
 0x3c7   : > { %p1795_p10 = pneg %p1794_p9 }
 0x3c9   : > { %2224 = dma.done.wait (%p1795_p10), %s1330_s15, 64  }
 0x3ca   : > { %2226 = vsyncadd (%p1795_p10), %s1330_s15, 4294967232  ;;  %s3066_s19 = sadd.s32 4294967294, %s3063_s16   ;;  %p1797_p3 = pnand %p1804_p8, %p2420_p5 }
 0x3cb   : > { %s1339_s13 = sand.u32 1, %s3066_s19  }
 0x3cc   : > { %p1798_p4 = pneg %p1797_p3  ;;  %s1340_s10 = scalar_lea.sflag [#allocation14], %s1339_s13 }
 0x3ce   : > { %2228 = dma.done.wait (%p1798_p4), %s1340_s10, 64  }
 0x3cf   : > { %2230 = vsyncadd (%p1798_p4), %s1340_s10, 4294967232  ;;  %s32_s6 = sadd.s32 1, %s3063_s16   ;;  %s3068_s21 = sld [smem:[#allocation21_spill]] }
 0x3d0   : > { %p29_p1 = scmp.ge.s32.totalorder %s32_s6, 6   ;;  %s3069_s27 = sld [smem:[#allocation25_spill]] }
 0x3d1   : > { %s3070_s28 = sld [smem:[#allocation26_spill]]  ;;  %s3073_s22 = smov %s2241_s23 }
 0x3d2   : > { %s3071_s29 = sld [smem:[#allocation35_spill]]  ;;  %s3074_s23 = smov %s2484_s7 }
 0x3d3   : > { %s3072_s30 = sld [smem:[#allocation36_spill]]  ;;  %s3075_s24 = smov %s2249_s25 }
 0x3d4   : > { %s3076_s25 = smov %s2253_s26  ;;  %s3077_s26 = smov %s2491_s2 }
 0x3d5   : > { %s3078_s7 = smov %s32_s6  ;;  %31 = sbr.rel (!%p29_p1) target bundleno = 23 (0x17), region = 166 }
 0x3da   :  { %1356 = vsyncpa [#allocation5], 1 }
 0x3db   :  { %1358 = vsyncpa [#allocation5 + $0x1], 1 }
 0x3dc   :  { %1359 = vsyncpa [#allocation8], 1 }
 0x3dd   :  { %1361 = vsyncpa [#allocation8 + $0x1], 1 }
 0x3de   :  { %1362 = vsyncpa [#allocation11], 1 }
 0x3df   :  { %1364 = vsyncpa [#allocation11 + $0x1], 1 }
 0x3e0   :  { %1365 = vsyncpa [#allocation6], 1 }
 0x3e1   :  { %1367 = vsyncpa [#allocation6 + $0x1], 1 }
 0x3e2   :  { %1368 = vsyncpa [#allocation14], 1 }
 0x3e3   :  { %1370 = vsyncpa [#allocation14 + $0x1], 1 }

</bundles_post_ra>
